<compile_context>
chip_gen: v6e
topology: v6e:2x2x1
jax: 0.10.0
libtpu: 0.0.40
codegen_flags: <defaults>
</compile_context>

<pallas_src>
import math

import jax
import jax.numpy as jnp
import numpy as np
from jax.experimental import pallas as pl
from jax.experimental.pallas import tpu as pltpu

OUT_PAD = 128  # lane-dense padded output width for the FC head


# ------------------------------ fused kernel ---------------------------------

def _fused_lstm_kernel(x_ref, w_ih_ref, w_hh_ref, b_ref, w_fc_ref, b_fc_ref,
                       out_ref, seq_ref):
    n_layers, h_dim, g4 = w_hh_ref.shape        # (L, H, 4H) with 4H == 128
    b_pad = out_ref.shape[0]                    # padded batch (8)
    tb = x_ref.shape[0]                         # T * b_pad
    n_t = tb // b_pad                           # T

    # Lane-index mask: lanes [2H, 3H) hold the "g" gate (tanh); rest sigmoid.
    lane = jax.lax.broadcasted_iota(jnp.int32, (b_pad, g4), 1)
    g_mask = jnp.logical_and(lane >= 2 * h_dim, lane < 3 * h_dim)

    h = jnp.zeros((b_pad, h_dim), jnp.float32)
    for layer in range(n_layers):
        w_hh = w_hh_ref[layer]                  # (H, 4H) bf16, loaded once/layer
        bias = b_ref[layer]                     # (1, 4H) f32
        src = x_ref if layer == 0 else seq_ref  # (T*b_pad, H) f32

        # Batched input projection for ALL timesteps of this layer: one bf16
        # MXU matmul, result kept in SSA/vregs (no VMEM round-trip).
        xp = jnp.dot(src[...].astype(jnp.bfloat16), w_ih_ref[layer],
                     preferred_element_type=jnp.float32) + bias   # (tb, 4H) f32

        c = jnp.zeros((b_pad, h_dim), jnp.float32)
        for t in range(n_t):                    # fully unrolled (T is static)
            gates = xp[t * b_pad:(t + 1) * b_pad, :]
            if t > 0:                            # h0 == 0 -> skip at t == 0
                gates = gates + jnp.dot(h.astype(jnp.bfloat16), w_hh,
                                        preferred_element_type=jnp.float32)
            # ONE sigmoid + ONE tanh pass over the packed 128-lane gate vreg.
            act = jnp.where(g_mask, jnp.tanh(gates), jax.nn.sigmoid(gates))
            # Align each gate to lane offset 0 with XLU rolls (free slot).
            i_g = act[:, :h_dim]
            f_g = pltpu.roll(act, shift=3 * h_dim, axis=1)[:, :h_dim]
            g_g = pltpu.roll(act, shift=2 * h_dim, axis=1)[:, :h_dim]
            o_g = pltpu.roll(act, shift=1 * h_dim, axis=1)[:, :h_dim]
            c = f_g * c + i_g * g_g
            h = o_g * jnp.tanh(c)
            if layer < n_layers - 1:            # last layer only needs final h
                seq_ref[t * b_pad:(t + 1) * b_pad, :] = h

    # Fused FC head on the final hidden state of the last layer.
    out_ref[...] = (
        jnp.dot(h.astype(jnp.bfloat16), w_fc_ref[...],
                preferred_element_type=jnp.float32)
        + b_fc_ref[...]
    )


def _fused_lstm_call(x_flat, w_ih, w_hh, b, w_fc, b_fc, *, b_pad):
    tb, h_dim = x_flat.shape
    vmem = pl.BlockSpec(memory_space=pltpu.MemorySpace.VMEM)
    return pl.pallas_call(
        _fused_lstm_kernel,
        out_shape=jax.ShapeDtypeStruct((b_pad, OUT_PAD), jnp.float32),
        in_specs=[vmem] * 6,
        out_specs=vmem,
        scratch_shapes=[pltpu.VMEM((tb, h_dim), jnp.float32)],  # hidden seq
    )(x_flat, w_ih, w_hh, b, w_fc, b_fc)


# ------------------------- parameter init / packing --------------------------

def init_params(key, input_dim, hidden_dim, layer_dim, output_dim):
    """Deterministic params, matching PyTorch nn.LSTM / nn.Linear shapes."""
    params = {"lstm": [], "hidden_dim": hidden_dim}
    k = 1.0 / math.sqrt(hidden_dim)
    for layer in range(layer_dim):
        d_in = input_dim if layer == 0 else hidden_dim
        key, k1, k2, k3, k4 = jax.random.split(key, 5)
        w_ih = jax.random.uniform(k1, (4 * hidden_dim, d_in), jnp.float32, -k, k)
        w_hh = jax.random.uniform(k2, (4 * hidden_dim, hidden_dim), jnp.float32, -k, k)
        b_ih = jax.random.uniform(k3, (4 * hidden_dim,), jnp.float32, -k, k)
        b_hh = jax.random.uniform(k4, (4 * hidden_dim,), jnp.float32, -k, k)
        params["lstm"].append({
            "w_ih_t": w_ih.T,                    # (D_in, 4H), gate order i,f,g,o
            "w_hh_t": w_hh.T,                    # (H, 4H)
            "bias": (b_ih + b_hh)[None, :],      # (1, 4H)
        })
    key, k5, k6 = jax.random.split(key, 3)
    w_fc = jax.random.uniform(k5, (output_dim, hidden_dim), jnp.float32, -k, k)
    b_fc = jax.random.uniform(k6, (output_dim,), jnp.float32, -k, k)
    params["fc"] = {"w_t": w_fc.T, "b": b_fc[None, :]}   # (H, O), (1, O)
    return params


def pack_params(params):
    """Pad / cast PyTorch-shaped params into the kernel's packed bf16 layout."""
    h = params["hidden_dim"]
    w_ih_l, w_hh_l, b_l = [], [], []
    for lp in params["lstm"]:
        d_in = lp["w_ih_t"].shape[0]
        assert d_in <= h, "input_dim must fit in the hidden-dim padding"
        w_ih = jnp.zeros((h, 4 * h), jnp.float32).at[:d_in, :].set(lp["w_ih_t"])
        w_ih_l.append(w_ih.astype(jnp.bfloat16))        # zero rows for pad feats
        w_hh_l.append(lp["w_hh_t"].astype(jnp.bfloat16))
        b_l.append(lp["bias"])                           # keep bias f32
    w_fc_t = params["fc"]["w_t"]                         # (H, O)
    o = int(w_fc_t.shape[1])
    w_fc_p = (jnp.zeros((h, OUT_PAD), jnp.float32)
              .at[:, :o].set(w_fc_t).astype(jnp.bfloat16))
    b_fc_p = jnp.zeros((1, OUT_PAD), jnp.float32).at[0, :o].set(params["fc"]["b"][0])
    return {
        "w_ih": jnp.stack(w_ih_l),                       # (L, H, 4H) bf16
        "w_hh": jnp.stack(w_hh_l),                       # (L, H, 4H) bf16
        "b": jnp.stack(b_l),                             # (L, 1, 4H) f32
        "w_fc": w_fc_p,                                  # (H, OUT_PAD) bf16
        "b_fc": b_fc_p,                                  # (1, OUT_PAD) f32
        "hidden_dim": h,
        "output_dim": o,
    }


# --------------------------------- forward -----------------------------------

def lstm_model_forward(packed, x_btd):
    """x_btd: (B, T, input_dim) -> (B, output_dim), matching the PyTorch forward."""
    B, T, D = x_btd.shape
    h = packed["hidden_dim"]
    b_pad = max(8, -(-B // 8) * 8)                       # pad batch to sublane width
    x = jnp.transpose(x_btd, (1, 0, 2)).astype(jnp.float32)     # (T, B, D)
    x = jnp.pad(x, ((0, 0), (0, b_pad - B), (0, h - D)))        # (T, B_pad, H)
    x_flat = x.reshape(T * b_pad, h)
    out_pad = _fused_lstm_call(x_flat, packed["w_ih"], packed["w_hh"],
                               packed["b"], packed["w_fc"], packed["b_fc"],
                               b_pad=b_pad)
    return out_pad[:B, :packed["output_dim"]]


def reference_forward(params, x_btd):
    """Pure-JAX reference with exact PyTorch LSTM cell semantics (for checking)."""
    x = jnp.transpose(x_btd, (1, 0, 2)).astype(jnp.float32)     # (T, B, D)
    T, B, _ = x.shape
    H = params["hidden_dim"]
    seq = x
    for lp in params["lstm"]:
        h = jnp.zeros((B, H), jnp.float32)
        c = jnp.zeros((B, H), jnp.float32)
        outs = []
        for t in range(T):
            gates = seq[t] @ lp["w_ih_t"] + h @ lp["w_hh_t"] + lp["bias"][0]
            i = jax.nn.sigmoid(gates[:, 0 * H:1 * H])
            f = jax.nn.sigmoid(gates[:, 1 * H:2 * H])
            g = jnp.tanh(gates[:, 2 * H:3 * H])
            o = jax.nn.sigmoid(gates[:, 3 * H:4 * H])
            c = f * c + i * g
            h = o * jnp.tanh(c)
            outs.append(h)
        seq = jnp.stack(outs, axis=0)
    return seq[-1] @ params["fc"]["w_t"] + params["fc"]["b"]


if __name__ == "__main__":
    batch = 2
    seq_len = 8
    input_dim = 4
    hidden_dim = 32
    layer_dim = 3
    output_dim = 1

    key = jax.random.PRNGKey(0)
    key, xk = jax.random.split(key)
    x = jax.random.normal(xk, (batch, seq_len, input_dim), jnp.float32)

    params = init_params(key, input_dim, hidden_dim, layer_dim, output_dim)
    packed = pack_params(params)

    out = lstm_model_forward(packed, x)
    jax.block_until_ready(out)
    assert out.shape == (batch, output_dim), out.shape

    ref = reference_forward(params, x)
    np.testing.assert_allclose(np.asarray(out), np.asarray(ref),
                               rtol=1e-2, atol=1e-2)

    print("KERNEL_OK")
</pallas_src>

<mosaic_0001>
module attributes {stable_mosaic.version = 11 : i64} {
  func.func @_fused_lstm_kernel(%arg0: memref<64x32xf32, #tpu.memory_space<vmem>>, %arg1: memref<3x32x128xbf16, #tpu.memory_space<vmem>>, %arg2: memref<3x32x128xbf16, #tpu.memory_space<vmem>>, %arg3: memref<3x1x128xf32, #tpu.memory_space<vmem>>, %arg4: memref<32x128xbf16, #tpu.memory_space<vmem>>, %arg5: memref<1x128xf32, #tpu.memory_space<vmem>>, %arg6: memref<8x128xf32, #tpu.memory_space<vmem>>, %arg7: memref<64x32xf32, #tpu.memory_space<vmem>>) attributes {dimension_semantics = [], scalar_prefetch = 0 : i64, scratch_operands = 1 : i64, tpu.core_type = #tpu.core_type<tc>} {
    %0 = tpu.iota {dimensions = array<i32: 1>} : vector<8x128xi32>
    %c64_i32 = arith.constant 64 : i32
    %1 = vector.broadcast %c64_i32 : i32 to vector<8x128xi32>
    %2 = arith.cmpi sge, %0, %1 : vector<8x128xi32>
    %c96_i32 = arith.constant 96 : i32
    %3 = vector.broadcast %c96_i32 : i32 to vector<8x128xi32>
    %4 = arith.cmpi slt, %0, %3 : vector<8x128xi32>
    %5 = arith.andi %2, %4 : vector<8x128xi1>
    %c0 = arith.constant 0 : index
    %c0_0 = arith.constant 0 : index
    %c0_1 = arith.constant 0 : index
    %6 = vector.load %arg2[%c0, %c0_0, %c0_1] : memref<3x32x128xbf16, #tpu.memory_space<vmem>>, vector<1x32x128xbf16>
    %7 = vector.shape_cast %6 : vector<1x32x128xbf16> to vector<32x128xbf16>
    %c0_2 = arith.constant 0 : index
    %c0_3 = arith.constant 0 : index
    %c0_4 = arith.constant 0 : index
    %8 = vector.load %arg3[%c0_2, %c0_3, %c0_4] : memref<3x1x128xf32, #tpu.memory_space<vmem>>, vector<1x1x128xf32>
    %9 = vector.shape_cast %8 : vector<1x1x128xf32> to vector<1x128xf32>
    %c0_5 = arith.constant 0 : index
    %c0_6 = arith.constant 0 : index
    %10 = vector.load %arg0[%c0_5, %c0_6] : memref<64x32xf32, #tpu.memory_space<vmem>>, vector<64x32xf32>
    %11 = arith.truncf %10 : vector<64x32xf32> to vector<64x32xbf16>
    %c0_7 = arith.constant 0 : index
    %c0_8 = arith.constant 0 : index
    %c0_9 = arith.constant 0 : index
    %12 = vector.load %arg1[%c0_7, %c0_8, %c0_9] : memref<3x32x128xbf16, #tpu.memory_space<vmem>>, vector<1x32x128xbf16>
    %13 = vector.shape_cast %12 : vector<1x32x128xbf16> to vector<32x128xbf16>
    %cst = arith.constant dense<0.000000e+00> : vector<64x128xf32>
    %14 = tpu.matmul %11, %13, %cst {dimension_numbers = #tpu.dot_dimension_numbers<[1], [0], [0], [1], [0, 0, 1, 1], [], []>} : vector<64x32xbf16>, vector<32x128xbf16>, vector<64x128xf32> -> vector<64x128xf32>
    %15 = vector.broadcast %9 : vector<1x128xf32> to vector<64x128xf32>
    %16 = arith.addf %14, %15 : vector<64x128xf32>
    %cst_10 = arith.constant 0.000000e+00 : f32
    %17 = vector.broadcast %cst_10 : f32 to vector<8x32xf32>
    %18 = vector.extract_strided_slice %16 {offsets = [0, 0], sizes = [8, 128], strides = [1, 1]} : vector<64x128xf32> to vector<8x128xf32>
    %19 = math.tanh %18 : vector<8x128xf32>
    %20 = arith.negf %18 : vector<8x128xf32>
    %21 = math.exp %20 : vector<8x128xf32>
    %cst_11 = arith.constant 1.000000e+00 : f32
    %22 = vector.broadcast %cst_11 : f32 to vector<8x128xf32>
    %23 = arith.addf %22, %21 : vector<8x128xf32>
    %24 = arith.divf %22, %23 : vector<8x128xf32>
    %25 = arith.select %5, %19, %24 : vector<8x128xi1>, vector<8x128xf32>
    %26 = vector.extract_strided_slice %25 {offsets = [0, 0], sizes = [8, 32], strides = [1, 1]} : vector<8x128xf32> to vector<8x32xf32>
    %c96_i32_12 = arith.constant 96 : i32
    %27 = tpu.dynamic_rotate %25 by %c96_i32_12 dim 1 : vector<8x128xf32>, i32 -> vector<8x128xf32>
    %28 = vector.extract_strided_slice %27 {offsets = [0, 0], sizes = [8, 32], strides = [1, 1]} : vector<8x128xf32> to vector<8x32xf32>
    %c64_i32_13 = arith.constant 64 : i32
    %29 = tpu.dynamic_rotate %25 by %c64_i32_13 dim 1 : vector<8x128xf32>, i32 -> vector<8x128xf32>
    %30 = vector.extract_strided_slice %29 {offsets = [0, 0], sizes = [8, 32], strides = [1, 1]} : vector<8x128xf32> to vector<8x32xf32>
    %c32_i32 = arith.constant 32 : i32
    %31 = tpu.dynamic_rotate %25 by %c32_i32 dim 1 : vector<8x128xf32>, i32 -> vector<8x128xf32>
    %32 = vector.extract_strided_slice %31 {offsets = [0, 0], sizes = [8, 32], strides = [1, 1]} : vector<8x128xf32> to vector<8x32xf32>
    %33 = arith.mulf %28, %17 : vector<8x32xf32>
    %34 = arith.mulf %26, %30 : vector<8x32xf32>
    %35 = arith.addf %33, %34 : vector<8x32xf32>
    %36 = math.tanh %35 : vector<8x32xf32>
    %37 = arith.mulf %32, %36 : vector<8x32xf32>
    %c0_14 = arith.constant 0 : index
    %c0_15 = arith.constant 0 : index
    %38 = vector.load %arg7[%c0_14, %c0_15] : memref<64x32xf32, #tpu.memory_space<vmem>>, vector<8x32xf32>
    tpu.vector_store %arg7[%c0_14, %c0_15], %37 {strides = array<i32>} : memref<64x32xf32, #tpu.memory_space<vmem>>, vector<8x32xf32>,
    %39 = vector.extract_strided_slice %16 {offsets = [8, 0], sizes = [8, 128], strides = [1, 1]} : vector<64x128xf32> to vector<8x128xf32>
    %40 = arith.truncf %37 : vector<8x32xf32> to vector<8x32xbf16>
    %cst_16 = arith.constant dense<0.000000e+00> : vector<8x128xf32>
    %41 = tpu.matmul %40, %7, %cst_16 {dimension_numbers = #tpu.dot_dimension_numbers<[1], [0], [0], [1], [0, 0, 1, 1], [], []>} : vector<8x32xbf16>, vector<32x128xbf16>, vector<8x128xf32> -> vector<8x128xf32>
    %42 = arith.addf %39, %41 : vector<8x128xf32>
    %43 = math.tanh %42 : vector<8x128xf32>
    %44 = arith.negf %42 : vector<8x128xf32>
    %45 = math.exp %44 : vector<8x128xf32>
    %cst_17 = arith.constant 1.000000e+00 : f32
    %46 = vector.broadcast %cst_17 : f32 to vector<8x128xf32>
    %47 = arith.addf %46, %45 : vector<8x128xf32>
    %48 = arith.divf %46, %47 : vector<8x128xf32>
    %49 = arith.select %5, %43, %48 : vector<8x128xi1>, vector<8x128xf32>
    %50 = vector.extract_strided_slice %49 {offsets = [0, 0], sizes = [8, 32], strides = [1, 1]} : vector<8x128xf32> to vector<8x32xf32>
    %c96_i32_18 = arith.constant 96 : i32
    %51 = tpu.dynamic_rotate %49 by %c96_i32_18 dim 1 : vector<8x128xf32>, i32 -> vector<8x128xf32>
    %52 = vector.extract_strided_slice %51 {offsets = [0, 0], sizes = [8, 32], strides = [1, 1]} : vector<8x128xf32> to vector<8x32xf32>
    %c64_i32_19 = arith.constant 64 : i32
    %53 = tpu.dynamic_rotate %49 by %c64_i32_19 dim 1 : vector<8x128xf32>, i32 -> vector<8x128xf32>
    %54 = vector.extract_strided_slice %53 {offsets = [0, 0], sizes = [8, 32], strides = [1, 1]} : vector<8x128xf32> to vector<8x32xf32>
    %c32_i32_20 = arith.constant 32 : i32
    %55 = tpu.dynamic_rotate %49 by %c32_i32_20 dim 1 : vector<8x128xf32>, i32 -> vector<8x128xf32>
    %56 = vector.extract_strided_slice %55 {offsets = [0, 0], sizes = [8, 32], strides = [1, 1]} : vector<8x128xf32> to vector<8x32xf32>
    %57 = arith.mulf %52, %35 : vector<8x32xf32>
    %58 = arith.mulf %50, %54 : vector<8x32xf32>
    %59 = arith.addf %57, %58 : vector<8x32xf32>
    %60 = math.tanh %59 : vector<8x32xf32>
    %61 = arith.mulf %56, %60 : vector<8x32xf32>
    %c8 = arith.constant 8 : index
    %c0_21 = arith.constant 0 : index
    %62 = vector.load %arg7[%c8, %c0_21] : memref<64x32xf32, #tpu.memory_space<vmem>>, vector<8x32xf32>
    tpu.vector_store %arg7[%c8, %c0_21], %61 {strides = array<i32>} : memref<64x32xf32, #tpu.memory_space<vmem>>, vector<8x32xf32>,
    %63 = vector.extract_strided_slice %16 {offsets = [16, 0], sizes = [8, 128], strides = [1, 1]} : vector<64x128xf32> to vector<8x128xf32>
    %64 = arith.truncf %61 : vector<8x32xf32> to vector<8x32xbf16>
    %cst_22 = arith.constant dense<0.000000e+00> : vector<8x128xf32>
    %65 = tpu.matmul %64, %7, %cst_22 {dimension_numbers = #tpu.dot_dimension_numbers<[1], [0], [0], [1], [0, 0, 1, 1], [], []>} : vector<8x32xbf16>, vector<32x128xbf16>, vector<8x128xf32> -> vector<8x128xf32>
    %66 = arith.addf %63, %65 : vector<8x128xf32>
    %67 = math.tanh %66 : vector<8x128xf32>
    %68 = arith.negf %66 : vector<8x128xf32>
    %69 = math.exp %68 : vector<8x128xf32>
    %cst_23 = arith.constant 1.000000e+00 : f32
    %70 = vector.broadcast %cst_23 : f32 to vector<8x128xf32>
    %71 = arith.addf %70, %69 : vector<8x128xf32>
    %72 = arith.divf %70, %71 : vector<8x128xf32>
    %73 = arith.select %5, %67, %72 : vector<8x128xi1>, vector<8x128xf32>
    %74 = vector.extract_strided_slice %73 {offsets = [0, 0], sizes = [8, 32], strides = [1, 1]} : vector<8x128xf32> to vector<8x32xf32>
    %c96_i32_24 = arith.constant 96 : i32
    %75 = tpu.dynamic_rotate %73 by %c96_i32_24 dim 1 : vector<8x128xf32>, i32 -> vector<8x128xf32>
    %76 = vector.extract_strided_slice %75 {offsets = [0, 0], sizes = [8, 32], strides = [1, 1]} : vector<8x128xf32> to vector<8x32xf32>
    %c64_i32_25 = arith.constant 64 : i32
    %77 = tpu.dynamic_rotate %73 by %c64_i32_25 dim 1 : vector<8x128xf32>, i32 -> vector<8x128xf32>
    %78 = vector.extract_strided_slice %77 {offsets = [0, 0], sizes = [8, 32], strides = [1, 1]} : vector<8x128xf32> to vector<8x32xf32>
    %c32_i32_26 = arith.constant 32 : i32
    %79 = tpu.dynamic_rotate %73 by %c32_i32_26 dim 1 : vector<8x128xf32>, i32 -> vector<8x128xf32>
    %80 = vector.extract_strided_slice %79 {offsets = [0, 0], sizes = [8, 32], strides = [1, 1]} : vector<8x128xf32> to vector<8x32xf32>
    %81 = arith.mulf %76, %59 : vector<8x32xf32>
    %82 = arith.mulf %74, %78 : vector<8x32xf32>
    %83 = arith.addf %81, %82 : vector<8x32xf32>
    %84 = math.tanh %83 : vector<8x32xf32>
    %85 = arith.mulf %80, %84 : vector<8x32xf32>
    %c16 = arith.constant 16 : index
    %c0_27 = arith.constant 0 : index
    %86 = vector.load %arg7[%c16, %c0_27] : memref<64x32xf32, #tpu.memory_space<vmem>>, vector<8x32xf32>
    tpu.vector_store %arg7[%c16, %c0_27], %85 {strides = array<i32>} : memref<64x32xf32, #tpu.memory_space<vmem>>, vector<8x32xf32>,
    %87 = vector.extract_strided_slice %16 {offsets = [24, 0], sizes = [8, 128], strides = [1, 1]} : vector<64x128xf32> to vector<8x128xf32>
    %88 = arith.truncf %85 : vector<8x32xf32> to vector<8x32xbf16>
    %cst_28 = arith.constant dense<0.000000e+00> : vector<8x128xf32>
    %89 = tpu.matmul %88, %7, %cst_28 {dimension_numbers = #tpu.dot_dimension_numbers<[1], [0], [0], [1], [0, 0, 1, 1], [], []>} : vector<8x32xbf16>, vector<32x128xbf16>, vector<8x128xf32> -> vector<8x128xf32>
    %90 = arith.addf %87, %89 : vector<8x128xf32>
    %91 = math.tanh %90 : vector<8x128xf32>
    %92 = arith.negf %90 : vector<8x128xf32>
    %93 = math.exp %92 : vector<8x128xf32>
    %cst_29 = arith.constant 1.000000e+00 : f32
    %94 = vector.broadcast %cst_29 : f32 to vector<8x128xf32>
    %95 = arith.addf %94, %93 : vector<8x128xf32>
    %96 = arith.divf %94, %95 : vector<8x128xf32>
    %97 = arith.select %5, %91, %96 : vector<8x128xi1>, vector<8x128xf32>
    %98 = vector.extract_strided_slice %97 {offsets = [0, 0], sizes = [8, 32], strides = [1, 1]} : vector<8x128xf32> to vector<8x32xf32>
    %c96_i32_30 = arith.constant 96 : i32
    %99 = tpu.dynamic_rotate %97 by %c96_i32_30 dim 1 : vector<8x128xf32>, i32 -> vector<8x128xf32>
    %100 = vector.extract_strided_slice %99 {offsets = [0, 0], sizes = [8, 32], strides = [1, 1]} : vector<8x128xf32> to vector<8x32xf32>
    %c64_i32_31 = arith.constant 64 : i32
    %101 = tpu.dynamic_rotate %97 by %c64_i32_31 dim 1 : vector<8x128xf32>, i32 -> vector<8x128xf32>
    %102 = vector.extract_strided_slice %101 {offsets = [0, 0], sizes = [8, 32], strides = [1, 1]} : vector<8x128xf32> to vector<8x32xf32>
    %c32_i32_32 = arith.constant 32 : i32
    %103 = tpu.dynamic_rotate %97 by %c32_i32_32 dim 1 : vector<8x128xf32>, i32 -> vector<8x128xf32>
    %104 = vector.extract_strided_slice %103 {offsets = [0, 0], sizes = [8, 32], strides = [1, 1]} : vector<8x128xf32> to vector<8x32xf32>
    %105 = arith.mulf %100, %83 : vector<8x32xf32>
    %106 = arith.mulf %98, %102 : vector<8x32xf32>
    %107 = arith.addf %105, %106 : vector<8x32xf32>
    %108 = math.tanh %107 : vector<8x32xf32>
    %109 = arith.mulf %104, %108 : vector<8x32xf32>
    %c24 = arith.constant 24 : index
    %c0_33 = arith.constant 0 : index
    %110 = vector.load %arg7[%c24, %c0_33] : memref<64x32xf32, #tpu.memory_space<vmem>>, vector<8x32xf32>
    tpu.vector_store %arg7[%c24, %c0_33], %109 {strides = array<i32>} : memref<64x32xf32, #tpu.memory_space<vmem>>, vector<8x32xf32>,
    %111 = vector.extract_strided_slice %16 {offsets = [32, 0], sizes = [8, 128], strides = [1, 1]} : vector<64x128xf32> to vector<8x128xf32>
    %112 = arith.truncf %109 : vector<8x32xf32> to vector<8x32xbf16>
    %cst_34 = arith.constant dense<0.000000e+00> : vector<8x128xf32>
    %113 = tpu.matmul %112, %7, %cst_34 {dimension_numbers = #tpu.dot_dimension_numbers<[1], [0], [0], [1], [0, 0, 1, 1], [], []>} : vector<8x32xbf16>, vector<32x128xbf16>, vector<8x128xf32> -> vector<8x128xf32>
    %114 = arith.addf %111, %113 : vector<8x128xf32>
    %115 = math.tanh %114 : vector<8x128xf32>
    %116 = arith.negf %114 : vector<8x128xf32>
    %117 = math.exp %116 : vector<8x128xf32>
    %cst_35 = arith.constant 1.000000e+00 : f32
    %118 = vector.broadcast %cst_35 : f32 to vector<8x128xf32>
    %119 = arith.addf %118, %117 : vector<8x128xf32>
    %120 = arith.divf %118, %119 : vector<8x128xf32>
    %121 = arith.select %5, %115, %120 : vector<8x128xi1>, vector<8x128xf32>
    %122 = vector.extract_strided_slice %121 {offsets = [0, 0], sizes = [8, 32], strides = [1, 1]} : vector<8x128xf32> to vector<8x32xf32>
    %c96_i32_36 = arith.constant 96 : i32
    %123 = tpu.dynamic_rotate %121 by %c96_i32_36 dim 1 : vector<8x128xf32>, i32 -> vector<8x128xf32>
    %124 = vector.extract_strided_slice %123 {offsets = [0, 0], sizes = [8, 32], strides = [1, 1]} : vector<8x128xf32> to vector<8x32xf32>
    %c64_i32_37 = arith.constant 64 : i32
    %125 = tpu.dynamic_rotate %121 by %c64_i32_37 dim 1 : vector<8x128xf32>, i32 -> vector<8x128xf32>
    %126 = vector.extract_strided_slice %125 {offsets = [0, 0], sizes = [8, 32], strides = [1, 1]} : vector<8x128xf32> to vector<8x32xf32>
    %c32_i32_38 = arith.constant 32 : i32
    %127 = tpu.dynamic_rotate %121 by %c32_i32_38 dim 1 : vector<8x128xf32>, i32 -> vector<8x128xf32>
    %128 = vector.extract_strided_slice %127 {offsets = [0, 0], sizes = [8, 32], strides = [1, 1]} : vector<8x128xf32> to vector<8x32xf32>
    %129 = arith.mulf %124, %107 : vector<8x32xf32>
    %130 = arith.mulf %122, %126 : vector<8x32xf32>
    %131 = arith.addf %129, %130 : vector<8x32xf32>
    %132 = math.tanh %131 : vector<8x32xf32>
    %133 = arith.mulf %128, %132 : vector<8x32xf32>
    %c32 = arith.constant 32 : index
    %c0_39 = arith.constant 0 : index
    %134 = vector.load %arg7[%c32, %c0_39] : memref<64x32xf32, #tpu.memory_space<vmem>>, vector<8x32xf32>
    tpu.vector_store %arg7[%c32, %c0_39], %133 {strides = array<i32>} : memref<64x32xf32, #tpu.memory_space<vmem>>, vector<8x32xf32>,
    %135 = vector.extract_strided_slice %16 {offsets = [40, 0], sizes = [8, 128], strides = [1, 1]} : vector<64x128xf32> to vector<8x128xf32>
    %136 = arith.truncf %133 : vector<8x32xf32> to vector<8x32xbf16>
    %cst_40 = arith.constant dense<0.000000e+00> : vector<8x128xf32>
    %137 = tpu.matmul %136, %7, %cst_40 {dimension_numbers = #tpu.dot_dimension_numbers<[1], [0], [0], [1], [0, 0, 1, 1], [], []>} : vector<8x32xbf16>, vector<32x128xbf16>, vector<8x128xf32> -> vector<8x128xf32>
    %138 = arith.addf %135, %137 : vector<8x128xf32>
    %139 = math.tanh %138 : vector<8x128xf32>
    %140 = arith.negf %138 : vector<8x128xf32>
    %141 = math.exp %140 : vector<8x128xf32>
    %cst_41 = arith.constant 1.000000e+00 : f32
    %142 = vector.broadcast %cst_41 : f32 to vector<8x128xf32>
    %143 = arith.addf %142, %141 : vector<8x128xf32>
    %144 = arith.divf %142, %143 : vector<8x128xf32>
    %145 = arith.select %5, %139, %144 : vector<8x128xi1>, vector<8x128xf32>
    %146 = vector.extract_strided_slice %145 {offsets = [0, 0], sizes = [8, 32], strides = [1, 1]} : vector<8x128xf32> to vector<8x32xf32>
    %c96_i32_42 = arith.constant 96 : i32
    %147 = tpu.dynamic_rotate %145 by %c96_i32_42 dim 1 : vector<8x128xf32>, i32 -> vector<8x128xf32>
    %148 = vector.extract_strided_slice %147 {offsets = [0, 0], sizes = [8, 32], strides = [1, 1]} : vector<8x128xf32> to vector<8x32xf32>
    %c64_i32_43 = arith.constant 64 : i32
    %149 = tpu.dynamic_rotate %145 by %c64_i32_43 dim 1 : vector<8x128xf32>, i32 -> vector<8x128xf32>
    %150 = vector.extract_strided_slice %149 {offsets = [0, 0], sizes = [8, 32], strides = [1, 1]} : vector<8x128xf32> to vector<8x32xf32>
    %c32_i32_44 = arith.constant 32 : i32
    %151 = tpu.dynamic_rotate %145 by %c32_i32_44 dim 1 : vector<8x128xf32>, i32 -> vector<8x128xf32>
    %152 = vector.extract_strided_slice %151 {offsets = [0, 0], sizes = [8, 32], strides = [1, 1]} : vector<8x128xf32> to vector<8x32xf32>
    %153 = arith.mulf %148, %131 : vector<8x32xf32>
    %154 = arith.mulf %146, %150 : vector<8x32xf32>
    %155 = arith.addf %153, %154 : vector<8x32xf32>
    %156 = math.tanh %155 : vector<8x32xf32>
    %157 = arith.mulf %152, %156 : vector<8x32xf32>
    %c40 = arith.constant 40 : index
    %c0_45 = arith.constant 0 : index
    %158 = vector.load %arg7[%c40, %c0_45] : memref<64x32xf32, #tpu.memory_space<vmem>>, vector<8x32xf32>
    tpu.vector_store %arg7[%c40, %c0_45], %157 {strides = array<i32>} : memref<64x32xf32, #tpu.memory_space<vmem>>, vector<8x32xf32>,
    %159 = vector.extract_strided_slice %16 {offsets = [48, 0], sizes = [8, 128], strides = [1, 1]} : vector<64x128xf32> to vector<8x128xf32>
    %160 = arith.truncf %157 : vector<8x32xf32> to vector<8x32xbf16>
    %cst_46 = arith.constant dense<0.000000e+00> : vector<8x128xf32>
    %161 = tpu.matmul %160, %7, %cst_46 {dimension_numbers = #tpu.dot_dimension_numbers<[1], [0], [0], [1], [0, 0, 1, 1], [], []>} : vector<8x32xbf16>, vector<32x128xbf16>, vector<8x128xf32> -> vector<8x128xf32>
    %162 = arith.addf %159, %161 : vector<8x128xf32>
    %163 = math.tanh %162 : vector<8x128xf32>
    %164 = arith.negf %162 : vector<8x128xf32>
    %165 = math.exp %164 : vector<8x128xf32>
    %cst_47 = arith.constant 1.000000e+00 : f32
    %166 = vector.broadcast %cst_47 : f32 to vector<8x128xf32>
    %167 = arith.addf %166, %165 : vector<8x128xf32>
    %168 = arith.divf %166, %167 : vector<8x128xf32>
    %169 = arith.select %5, %163, %168 : vector<8x128xi1>, vector<8x128xf32>
    %170 = vector.extract_strided_slice %169 {offsets = [0, 0], sizes = [8, 32], strides = [1, 1]} : vector<8x128xf32> to vector<8x32xf32>
    %c96_i32_48 = arith.constant 96 : i32
    %171 = tpu.dynamic_rotate %169 by %c96_i32_48 dim 1 : vector<8x128xf32>, i32 -> vector<8x128xf32>
    %172 = vector.extract_strided_slice %171 {offsets = [0, 0], sizes = [8, 32], strides = [1, 1]} : vector<8x128xf32> to vector<8x32xf32>
    %c64_i32_49 = arith.constant 64 : i32
    %173 = tpu.dynamic_rotate %169 by %c64_i32_49 dim 1 : vector<8x128xf32>, i32 -> vector<8x128xf32>
    %174 = vector.extract_strided_slice %173 {offsets = [0, 0], sizes = [8, 32], strides = [1, 1]} : vector<8x128xf32> to vector<8x32xf32>
    %c32_i32_50 = arith.constant 32 : i32
    %175 = tpu.dynamic_rotate %169 by %c32_i32_50 dim 1 : vector<8x128xf32>, i32 -> vector<8x128xf32>
    %176 = vector.extract_strided_slice %175 {offsets = [0, 0], sizes = [8, 32], strides = [1, 1]} : vector<8x128xf32> to vector<8x32xf32>
    %177 = arith.mulf %172, %155 : vector<8x32xf32>
    %178 = arith.mulf %170, %174 : vector<8x32xf32>
    %179 = arith.addf %177, %178 : vector<8x32xf32>
    %180 = math.tanh %179 : vector<8x32xf32>
    %181 = arith.mulf %176, %180 : vector<8x32xf32>
    %c48 = arith.constant 48 : index
    %c0_51 = arith.constant 0 : index
    %182 = vector.load %arg7[%c48, %c0_51] : memref<64x32xf32, #tpu.memory_space<vmem>>, vector<8x32xf32>
    tpu.vector_store %arg7[%c48, %c0_51], %181 {strides = array<i32>} : memref<64x32xf32, #tpu.memory_space<vmem>>, vector<8x32xf32>,
    %183 = vector.extract_strided_slice %16 {offsets = [56, 0], sizes = [8, 128], strides = [1, 1]} : vector<64x128xf32> to vector<8x128xf32>
    %184 = arith.truncf %181 : vector<8x32xf32> to vector<8x32xbf16>
    %cst_52 = arith.constant dense<0.000000e+00> : vector<8x128xf32>
    %185 = tpu.matmul %184, %7, %cst_52 {dimension_numbers = #tpu.dot_dimension_numbers<[1], [0], [0], [1], [0, 0, 1, 1], [], []>} : vector<8x32xbf16>, vector<32x128xbf16>, vector<8x128xf32> -> vector<8x128xf32>
    %186 = arith.addf %183, %185 : vector<8x128xf32>
    %187 = math.tanh %186 : vector<8x128xf32>
    %188 = arith.negf %186 : vector<8x128xf32>
    %189 = math.exp %188 : vector<8x128xf32>
    %cst_53 = arith.constant 1.000000e+00 : f32
    %190 = vector.broadcast %cst_53 : f32 to vector<8x128xf32>
    %191 = arith.addf %190, %189 : vector<8x128xf32>
    %192 = arith.divf %190, %191 : vector<8x128xf32>
    %193 = arith.select %5, %187, %192 : vector<8x128xi1>, vector<8x128xf32>
    %194 = vector.extract_strided_slice %193 {offsets = [0, 0], sizes = [8, 32], strides = [1, 1]} : vector<8x128xf32> to vector<8x32xf32>
    %c96_i32_54 = arith.constant 96 : i32
    %195 = tpu.dynamic_rotate %193 by %c96_i32_54 dim 1 : vector<8x128xf32>, i32 -> vector<8x128xf32>
    %196 = vector.extract_strided_slice %195 {offsets = [0, 0], sizes = [8, 32], strides = [1, 1]} : vector<8x128xf32> to vector<8x32xf32>
    %c64_i32_55 = arith.constant 64 : i32
    %197 = tpu.dynamic_rotate %193 by %c64_i32_55 dim 1 : vector<8x128xf32>, i32 -> vector<8x128xf32>
    %198 = vector.extract_strided_slice %197 {offsets = [0, 0], sizes = [8, 32], strides = [1, 1]} : vector<8x128xf32> to vector<8x32xf32>
    %c32_i32_56 = arith.constant 32 : i32
    %199 = tpu.dynamic_rotate %193 by %c32_i32_56 dim 1 : vector<8x128xf32>, i32 -> vector<8x128xf32>
    %200 = vector.extract_strided_slice %199 {offsets = [0, 0], sizes = [8, 32], strides = [1, 1]} : vector<8x128xf32> to vector<8x32xf32>
    %201 = arith.mulf %196, %179 : vector<8x32xf32>
    %202 = arith.mulf %194, %198 : vector<8x32xf32>
    %203 = arith.addf %201, %202 : vector<8x32xf32>
    %204 = math.tanh %203 : vector<8x32xf32>
    %205 = arith.mulf %200, %204 : vector<8x32xf32>
    %c56 = arith.constant 56 : index
    %c0_57 = arith.constant 0 : index
    %206 = vector.load %arg7[%c56, %c0_57] : memref<64x32xf32, #tpu.memory_space<vmem>>, vector<8x32xf32>
    tpu.vector_store %arg7[%c56, %c0_57], %205 {strides = array<i32>} : memref<64x32xf32, #tpu.memory_space<vmem>>, vector<8x32xf32>,
    %c1 = arith.constant 1 : index
    %c0_58 = arith.constant 0 : index
    %c0_59 = arith.constant 0 : index
    %207 = vector.load %arg2[%c1, %c0_58, %c0_59] : memref<3x32x128xbf16, #tpu.memory_space<vmem>>, vector<1x32x128xbf16>
    %208 = vector.shape_cast %207 : vector<1x32x128xbf16> to vector<32x128xbf16>
    %c1_60 = arith.constant 1 : index
    %c0_61 = arith.constant 0 : index
    %c0_62 = arith.constant 0 : index
    %209 = vector.load %arg3[%c1_60, %c0_61, %c0_62] : memref<3x1x128xf32, #tpu.memory_space<vmem>>, vector<1x1x128xf32>
    %210 = vector.shape_cast %209 : vector<1x1x128xf32> to vector<1x128xf32>
    %c0_63 = arith.constant 0 : index
    %c0_64 = arith.constant 0 : index
    %211 = vector.load %arg7[%c0_63, %c0_64] : memref<64x32xf32, #tpu.memory_space<vmem>>, vector<64x32xf32>
    %212 = arith.truncf %211 : vector<64x32xf32> to vector<64x32xbf16>
    %c1_65 = arith.constant 1 : index
    %c0_66 = arith.constant 0 : index
    %c0_67 = arith.constant 0 : index
    %213 = vector.load %arg1[%c1_65, %c0_66, %c0_67] : memref<3x32x128xbf16, #tpu.memory_space<vmem>>, vector<1x32x128xbf16>
    %214 = vector.shape_cast %213 : vector<1x32x128xbf16> to vector<32x128xbf16>
    %cst_68 = arith.constant dense<0.000000e+00> : vector<64x128xf32>
    %215 = tpu.matmul %212, %214, %cst_68 {dimension_numbers = #tpu.dot_dimension_numbers<[1], [0], [0], [1], [0, 0, 1, 1], [], []>} : vector<64x32xbf16>, vector<32x128xbf16>, vector<64x128xf32> -> vector<64x128xf32>
    %216 = vector.broadcast %210 : vector<1x128xf32> to vector<64x128xf32>
    %217 = arith.addf %215, %216 : vector<64x128xf32>
    %cst_69 = arith.constant 0.000000e+00 : f32
    %218 = vector.broadcast %cst_69 : f32 to vector<8x32xf32>
    %219 = vector.extract_strided_slice %217 {offsets = [0, 0], sizes = [8, 128], strides = [1, 1]} : vector<64x128xf32> to vector<8x128xf32>
    %220 = math.tanh %219 : vector<8x128xf32>
    %221 = arith.negf %219 : vector<8x128xf32>
    %222 = math.exp %221 : vector<8x128xf32>
    %cst_70 = arith.constant 1.000000e+00 : f32
    %223 = vector.broadcast %cst_70 : f32 to vector<8x128xf32>
    %224 = arith.addf %223, %222 : vector<8x128xf32>
    %225 = arith.divf %223, %224 : vector<8x128xf32>
    %226 = arith.select %5, %220, %225 : vector<8x128xi1>, vector<8x128xf32>
    %227 = vector.extract_strided_slice %226 {offsets = [0, 0], sizes = [8, 32], strides = [1, 1]} : vector<8x128xf32> to vector<8x32xf32>
    %c96_i32_71 = arith.constant 96 : i32
    %228 = tpu.dynamic_rotate %226 by %c96_i32_71 dim 1 : vector<8x128xf32>, i32 -> vector<8x128xf32>
    %229 = vector.extract_strided_slice %228 {offsets = [0, 0], sizes = [8, 32], strides = [1, 1]} : vector<8x128xf32> to vector<8x32xf32>
    %c64_i32_72 = arith.constant 64 : i32
    %230 = tpu.dynamic_rotate %226 by %c64_i32_72 dim 1 : vector<8x128xf32>, i32 -> vector<8x128xf32>
    %231 = vector.extract_strided_slice %230 {offsets = [0, 0], sizes = [8, 32], strides = [1, 1]} : vector<8x128xf32> to vector<8x32xf32>
    %c32_i32_73 = arith.constant 32 : i32
    %232 = tpu.dynamic_rotate %226 by %c32_i32_73 dim 1 : vector<8x128xf32>, i32 -> vector<8x128xf32>
    %233 = vector.extract_strided_slice %232 {offsets = [0, 0], sizes = [8, 32], strides = [1, 1]} : vector<8x128xf32> to vector<8x32xf32>
    %234 = arith.mulf %229, %218 : vector<8x32xf32>
    %235 = arith.mulf %227, %231 : vector<8x32xf32>
    %236 = arith.addf %234, %235 : vector<8x32xf32>
    %237 = math.tanh %236 : vector<8x32xf32>
    %238 = arith.mulf %233, %237 : vector<8x32xf32>
    %c0_74 = arith.constant 0 : index
    %c0_75 = arith.constant 0 : index
    %239 = vector.load %arg7[%c0_74, %c0_75] : memref<64x32xf32, #tpu.memory_space<vmem>>, vector<8x32xf32>
    tpu.vector_store %arg7[%c0_74, %c0_75], %238 {strides = array<i32>} : memref<64x32xf32, #tpu.memory_space<vmem>>, vector<8x32xf32>,
    %240 = vector.extract_strided_slice %217 {offsets = [8, 0], sizes = [8, 128], strides = [1, 1]} : vector<64x128xf32> to vector<8x128xf32>
    %241 = arith.truncf %238 : vector<8x32xf32> to vector<8x32xbf16>
    %cst_76 = arith.constant dense<0.000000e+00> : vector<8x128xf32>
    %242 = tpu.matmul %241, %208, %cst_76 {dimension_numbers = #tpu.dot_dimension_numbers<[1], [0], [0], [1], [0, 0, 1, 1], [], []>} : vector<8x32xbf16>, vector<32x128xbf16>, vector<8x128xf32> -> vector<8x128xf32>
    %243 = arith.addf %240, %242 : vector<8x128xf32>
    %244 = math.tanh %243 : vector<8x128xf32>
    %245 = arith.negf %243 : vector<8x128xf32>
    %246 = math.exp %245 : vector<8x128xf32>
    %cst_77 = arith.constant 1.000000e+00 : f32
    %247 = vector.broadcast %cst_77 : f32 to vector<8x128xf32>
    %248 = arith.addf %247, %246 : vector<8x128xf32>
    %249 = arith.divf %247, %248 : vector<8x128xf32>
    %250 = arith.select %5, %244, %249 : vector<8x128xi1>, vector<8x128xf32>
    %251 = vector.extract_strided_slice %250 {offsets = [0, 0], sizes = [8, 32], strides = [1, 1]} : vector<8x128xf32> to vector<8x32xf32>
    %c96_i32_78 = arith.constant 96 : i32
    %252 = tpu.dynamic_rotate %250 by %c96_i32_78 dim 1 : vector<8x128xf32>, i32 -> vector<8x128xf32>
    %253 = vector.extract_strided_slice %252 {offsets = [0, 0], sizes = [8, 32], strides = [1, 1]} : vector<8x128xf32> to vector<8x32xf32>
    %c64_i32_79 = arith.constant 64 : i32
    %254 = tpu.dynamic_rotate %250 by %c64_i32_79 dim 1 : vector<8x128xf32>, i32 -> vector<8x128xf32>
    %255 = vector.extract_strided_slice %254 {offsets = [0, 0], sizes = [8, 32], strides = [1, 1]} : vector<8x128xf32> to vector<8x32xf32>
    %c32_i32_80 = arith.constant 32 : i32
    %256 = tpu.dynamic_rotate %250 by %c32_i32_80 dim 1 : vector<8x128xf32>, i32 -> vector<8x128xf32>
    %257 = vector.extract_strided_slice %256 {offsets = [0, 0], sizes = [8, 32], strides = [1, 1]} : vector<8x128xf32> to vector<8x32xf32>
    %258 = arith.mulf %253, %236 : vector<8x32xf32>
    %259 = arith.mulf %251, %255 : vector<8x32xf32>
    %260 = arith.addf %258, %259 : vector<8x32xf32>
    %261 = math.tanh %260 : vector<8x32xf32>
    %262 = arith.mulf %257, %261 : vector<8x32xf32>
    %c8_81 = arith.constant 8 : index
    %c0_82 = arith.constant 0 : index
    %263 = vector.load %arg7[%c8_81, %c0_82] : memref<64x32xf32, #tpu.memory_space<vmem>>, vector<8x32xf32>
    tpu.vector_store %arg7[%c8_81, %c0_82], %262 {strides = array<i32>} : memref<64x32xf32, #tpu.memory_space<vmem>>, vector<8x32xf32>,
    %264 = vector.extract_strided_slice %217 {offsets = [16, 0], sizes = [8, 128], strides = [1, 1]} : vector<64x128xf32> to vector<8x128xf32>
    %265 = arith.truncf %262 : vector<8x32xf32> to vector<8x32xbf16>
    %cst_83 = arith.constant dense<0.000000e+00> : vector<8x128xf32>
    %266 = tpu.matmul %265, %208, %cst_83 {dimension_numbers = #tpu.dot_dimension_numbers<[1], [0], [0], [1], [0, 0, 1, 1], [], []>} : vector<8x32xbf16>, vector<32x128xbf16>, vector<8x128xf32> -> vector<8x128xf32>
    %267 = arith.addf %264, %266 : vector<8x128xf32>
    %268 = math.tanh %267 : vector<8x128xf32>
    %269 = arith.negf %267 : vector<8x128xf32>
    %270 = math.exp %269 : vector<8x128xf32>
    %cst_84 = arith.constant 1.000000e+00 : f32
    %271 = vector.broadcast %cst_84 : f32 to vector<8x128xf32>
    %272 = arith.addf %271, %270 : vector<8x128xf32>
    %273 = arith.divf %271, %272 : vector<8x128xf32>
    %274 = arith.select %5, %268, %273 : vector<8x128xi1>, vector<8x128xf32>
    %275 = vector.extract_strided_slice %274 {offsets = [0, 0], sizes = [8, 32], strides = [1, 1]} : vector<8x128xf32> to vector<8x32xf32>
    %c96_i32_85 = arith.constant 96 : i32
    %276 = tpu.dynamic_rotate %274 by %c96_i32_85 dim 1 : vector<8x128xf32>, i32 -> vector<8x128xf32>
    %277 = vector.extract_strided_slice %276 {offsets = [0, 0], sizes = [8, 32], strides = [1, 1]} : vector<8x128xf32> to vector<8x32xf32>
    %c64_i32_86 = arith.constant 64 : i32
    %278 = tpu.dynamic_rotate %274 by %c64_i32_86 dim 1 : vector<8x128xf32>, i32 -> vector<8x128xf32>
    %279 = vector.extract_strided_slice %278 {offsets = [0, 0], sizes = [8, 32], strides = [1, 1]} : vector<8x128xf32> to vector<8x32xf32>
    %c32_i32_87 = arith.constant 32 : i32
    %280 = tpu.dynamic_rotate %274 by %c32_i32_87 dim 1 : vector<8x128xf32>, i32 -> vector<8x128xf32>
    %281 = vector.extract_strided_slice %280 {offsets = [0, 0], sizes = [8, 32], strides = [1, 1]} : vector<8x128xf32> to vector<8x32xf32>
    %282 = arith.mulf %277, %260 : vector<8x32xf32>
    %283 = arith.mulf %275, %279 : vector<8x32xf32>
    %284 = arith.addf %282, %283 : vector<8x32xf32>
    %285 = math.tanh %284 : vector<8x32xf32>
    %286 = arith.mulf %281, %285 : vector<8x32xf32>
    %c16_88 = arith.constant 16 : index
    %c0_89 = arith.constant 0 : index
    %287 = vector.load %arg7[%c16_88, %c0_89] : memref<64x32xf32, #tpu.memory_space<vmem>>, vector<8x32xf32>
    tpu.vector_store %arg7[%c16_88, %c0_89], %286 {strides = array<i32>} : memref<64x32xf32, #tpu.memory_space<vmem>>, vector<8x32xf32>,
    %288 = vector.extract_strided_slice %217 {offsets = [24, 0], sizes = [8, 128], strides = [1, 1]} : vector<64x128xf32> to vector<8x128xf32>
    %289 = arith.truncf %286 : vector<8x32xf32> to vector<8x32xbf16>
    %cst_90 = arith.constant dense<0.000000e+00> : vector<8x128xf32>
    %290 = tpu.matmul %289, %208, %cst_90 {dimension_numbers = #tpu.dot_dimension_numbers<[1], [0], [0], [1], [0, 0, 1, 1], [], []>} : vector<8x32xbf16>, vector<32x128xbf16>, vector<8x128xf32> -> vector<8x128xf32>
    %291 = arith.addf %288, %290 : vector<8x128xf32>
    %292 = math.tanh %291 : vector<8x128xf32>
    %293 = arith.negf %291 : vector<8x128xf32>
    %294 = math.exp %293 : vector<8x128xf32>
    %cst_91 = arith.constant 1.000000e+00 : f32
    %295 = vector.broadcast %cst_91 : f32 to vector<8x128xf32>
    %296 = arith.addf %295, %294 : vector<8x128xf32>
    %297 = arith.divf %295, %296 : vector<8x128xf32>
    %298 = arith.select %5, %292, %297 : vector<8x128xi1>, vector<8x128xf32>
    %299 = vector.extract_strided_slice %298 {offsets = [0, 0], sizes = [8, 32], strides = [1, 1]} : vector<8x128xf32> to vector<8x32xf32>
    %c96_i32_92 = arith.constant 96 : i32
    %300 = tpu.dynamic_rotate %298 by %c96_i32_92 dim 1 : vector<8x128xf32>, i32 -> vector<8x128xf32>
    %301 = vector.extract_strided_slice %300 {offsets = [0, 0], sizes = [8, 32], strides = [1, 1]} : vector<8x128xf32> to vector<8x32xf32>
    %c64_i32_93 = arith.constant 64 : i32
    %302 = tpu.dynamic_rotate %298 by %c64_i32_93 dim 1 : vector<8x128xf32>, i32 -> vector<8x128xf32>
    %303 = vector.extract_strided_slice %302 {offsets = [0, 0], sizes = [8, 32], strides = [1, 1]} : vector<8x128xf32> to vector<8x32xf32>
    %c32_i32_94 = arith.constant 32 : i32
    %304 = tpu.dynamic_rotate %298 by %c32_i32_94 dim 1 : vector<8x128xf32>, i32 -> vector<8x128xf32>
    %305 = vector.extract_strided_slice %304 {offsets = [0, 0], sizes = [8, 32], strides = [1, 1]} : vector<8x128xf32> to vector<8x32xf32>
    %306 = arith.mulf %301, %284 : vector<8x32xf32>
    %307 = arith.mulf %299, %303 : vector<8x32xf32>
    %308 = arith.addf %306, %307 : vector<8x32xf32>
    %309 = math.tanh %308 : vector<8x32xf32>
    %310 = arith.mulf %305, %309 : vector<8x32xf32>
    %c24_95 = arith.constant 24 : index
    %c0_96 = arith.constant 0 : index
    %311 = vector.load %arg7[%c24_95, %c0_96] : memref<64x32xf32, #tpu.memory_space<vmem>>, vector<8x32xf32>
    tpu.vector_store %arg7[%c24_95, %c0_96], %310 {strides = array<i32>} : memref<64x32xf32, #tpu.memory_space<vmem>>, vector<8x32xf32>,
    %312 = vector.extract_strided_slice %217 {offsets = [32, 0], sizes = [8, 128], strides = [1, 1]} : vector<64x128xf32> to vector<8x128xf32>
    %313 = arith.truncf %310 : vector<8x32xf32> to vector<8x32xbf16>
    %cst_97 = arith.constant dense<0.000000e+00> : vector<8x128xf32>
    %314 = tpu.matmul %313, %208, %cst_97 {dimension_numbers = #tpu.dot_dimension_numbers<[1], [0], [0], [1], [0, 0, 1, 1], [], []>} : vector<8x32xbf16>, vector<32x128xbf16>, vector<8x128xf32> -> vector<8x128xf32>
    %315 = arith.addf %312, %314 : vector<8x128xf32>
    %316 = math.tanh %315 : vector<8x128xf32>
    %317 = arith.negf %315 : vector<8x128xf32>
    %318 = math.exp %317 : vector<8x128xf32>
    %cst_98 = arith.constant 1.000000e+00 : f32
    %319 = vector.broadcast %cst_98 : f32 to vector<8x128xf32>
    %320 = arith.addf %319, %318 : vector<8x128xf32>
    %321 = arith.divf %319, %320 : vector<8x128xf32>
    %322 = arith.select %5, %316, %321 : vector<8x128xi1>, vector<8x128xf32>
    %323 = vector.extract_strided_slice %322 {offsets = [0, 0], sizes = [8, 32], strides = [1, 1]} : vector<8x128xf32> to vector<8x32xf32>
    %c96_i32_99 = arith.constant 96 : i32
    %324 = tpu.dynamic_rotate %322 by %c96_i32_99 dim 1 : vector<8x128xf32>, i32 -> vector<8x128xf32>
    %325 = vector.extract_strided_slice %324 {offsets = [0, 0], sizes = [8, 32], strides = [1, 1]} : vector<8x128xf32> to vector<8x32xf32>
    %c64_i32_100 = arith.constant 64 : i32
    %326 = tpu.dynamic_rotate %322 by %c64_i32_100 dim 1 : vector<8x128xf32>, i32 -> vector<8x128xf32>
    %327 = vector.extract_strided_slice %326 {offsets = [0, 0], sizes = [8, 32], strides = [1, 1]} : vector<8x128xf32> to vector<8x32xf32>
    %c32_i32_101 = arith.constant 32 : i32
    %328 = tpu.dynamic_rotate %322 by %c32_i32_101 dim 1 : vector<8x128xf32>, i32 -> vector<8x128xf32>
    %329 = vector.extract_strided_slice %328 {offsets = [0, 0], sizes = [8, 32], strides = [1, 1]} : vector<8x128xf32> to vector<8x32xf32>
    %330 = arith.mulf %325, %308 : vector<8x32xf32>
    %331 = arith.mulf %323, %327 : vector<8x32xf32>
    %332 = arith.addf %330, %331 : vector<8x32xf32>
    %333 = math.tanh %332 : vector<8x32xf32>
    %334 = arith.mulf %329, %333 : vector<8x32xf32>
    %c32_102 = arith.constant 32 : index
    %c0_103 = arith.constant 0 : index
    %335 = vector.load %arg7[%c32_102, %c0_103] : memref<64x32xf32, #tpu.memory_space<vmem>>, vector<8x32xf32>
    tpu.vector_store %arg7[%c32_102, %c0_103], %334 {strides = array<i32>} : memref<64x32xf32, #tpu.memory_space<vmem>>, vector<8x32xf32>,
    %336 = vector.extract_strided_slice %217 {offsets = [40, 0], sizes = [8, 128], strides = [1, 1]} : vector<64x128xf32> to vector<8x128xf32>
    %337 = arith.truncf %334 : vector<8x32xf32> to vector<8x32xbf16>
    %cst_104 = arith.constant dense<0.000000e+00> : vector<8x128xf32>
    %338 = tpu.matmul %337, %208, %cst_104 {dimension_numbers = #tpu.dot_dimension_numbers<[1], [0], [0], [1], [0, 0, 1, 1], [], []>} : vector<8x32xbf16>, vector<32x128xbf16>, vector<8x128xf32> -> vector<8x128xf32>
    %339 = arith.addf %336, %338 : vector<8x128xf32>
    %340 = math.tanh %339 : vector<8x128xf32>
    %341 = arith.negf %339 : vector<8x128xf32>
    %342 = math.exp %341 : vector<8x128xf32>
    %cst_105 = arith.constant 1.000000e+00 : f32
    %343 = vector.broadcast %cst_105 : f32 to vector<8x128xf32>
    %344 = arith.addf %343, %342 : vector<8x128xf32>
    %345 = arith.divf %343, %344 : vector<8x128xf32>
    %346 = arith.select %5, %340, %345 : vector<8x128xi1>, vector<8x128xf32>
    %347 = vector.extract_strided_slice %346 {offsets = [0, 0], sizes = [8, 32], strides = [1, 1]} : vector<8x128xf32> to vector<8x32xf32>
    %c96_i32_106 = arith.constant 96 : i32
    %348 = tpu.dynamic_rotate %346 by %c96_i32_106 dim 1 : vector<8x128xf32>, i32 -> vector<8x128xf32>
    %349 = vector.extract_strided_slice %348 {offsets = [0, 0], sizes = [8, 32], strides = [1, 1]} : vector<8x128xf32> to vector<8x32xf32>
    %c64_i32_107 = arith.constant 64 : i32
    %350 = tpu.dynamic_rotate %346 by %c64_i32_107 dim 1 : vector<8x128xf32>, i32 -> vector<8x128xf32>
    %351 = vector.extract_strided_slice %350 {offsets = [0, 0], sizes = [8, 32], strides = [1, 1]} : vector<8x128xf32> to vector<8x32xf32>
    %c32_i32_108 = arith.constant 32 : i32
    %352 = tpu.dynamic_rotate %346 by %c32_i32_108 dim 1 : vector<8x128xf32>, i32 -> vector<8x128xf32>
    %353 = vector.extract_strided_slice %352 {offsets = [0, 0], sizes = [8, 32], strides = [1, 1]} : vector<8x128xf32> to vector<8x32xf32>
    %354 = arith.mulf %349, %332 : vector<8x32xf32>
    %355 = arith.mulf %347, %351 : vector<8x32xf32>
    %356 = arith.addf %354, %355 : vector<8x32xf32>
    %357 = math.tanh %356 : vector<8x32xf32>
    %358 = arith.mulf %353, %357 : vector<8x32xf32>
    %c40_109 = arith.constant 40 : index
    %c0_110 = arith.constant 0 : index
    %359 = vector.load %arg7[%c40_109, %c0_110] : memref<64x32xf32, #tpu.memory_space<vmem>>, vector<8x32xf32>
    tpu.vector_store %arg7[%c40_109, %c0_110], %358 {strides = array<i32>} : memref<64x32xf32, #tpu.memory_space<vmem>>, vector<8x32xf32>,
    %360 = vector.extract_strided_slice %217 {offsets = [48, 0], sizes = [8, 128], strides = [1, 1]} : vector<64x128xf32> to vector<8x128xf32>
    %361 = arith.truncf %358 : vector<8x32xf32> to vector<8x32xbf16>
    %cst_111 = arith.constant dense<0.000000e+00> : vector<8x128xf32>
    %362 = tpu.matmul %361, %208, %cst_111 {dimension_numbers = #tpu.dot_dimension_numbers<[1], [0], [0], [1], [0, 0, 1, 1], [], []>} : vector<8x32xbf16>, vector<32x128xbf16>, vector<8x128xf32> -> vector<8x128xf32>
    %363 = arith.addf %360, %362 : vector<8x128xf32>
    %364 = math.tanh %363 : vector<8x128xf32>
    %365 = arith.negf %363 : vector<8x128xf32>
    %366 = math.exp %365 : vector<8x128xf32>
    %cst_112 = arith.constant 1.000000e+00 : f32
    %367 = vector.broadcast %cst_112 : f32 to vector<8x128xf32>
    %368 = arith.addf %367, %366 : vector<8x128xf32>
    %369 = arith.divf %367, %368 : vector<8x128xf32>
    %370 = arith.select %5, %364, %369 : vector<8x128xi1>, vector<8x128xf32>
    %371 = vector.extract_strided_slice %370 {offsets = [0, 0], sizes = [8, 32], strides = [1, 1]} : vector<8x128xf32> to vector<8x32xf32>
    %c96_i32_113 = arith.constant 96 : i32
    %372 = tpu.dynamic_rotate %370 by %c96_i32_113 dim 1 : vector<8x128xf32>, i32 -> vector<8x128xf32>
    %373 = vector.extract_strided_slice %372 {offsets = [0, 0], sizes = [8, 32], strides = [1, 1]} : vector<8x128xf32> to vector<8x32xf32>
    %c64_i32_114 = arith.constant 64 : i32
    %374 = tpu.dynamic_rotate %370 by %c64_i32_114 dim 1 : vector<8x128xf32>, i32 -> vector<8x128xf32>
    %375 = vector.extract_strided_slice %374 {offsets = [0, 0], sizes = [8, 32], strides = [1, 1]} : vector<8x128xf32> to vector<8x32xf32>
    %c32_i32_115 = arith.constant 32 : i32
    %376 = tpu.dynamic_rotate %370 by %c32_i32_115 dim 1 : vector<8x128xf32>, i32 -> vector<8x128xf32>
    %377 = vector.extract_strided_slice %376 {offsets = [0, 0], sizes = [8, 32], strides = [1, 1]} : vector<8x128xf32> to vector<8x32xf32>
    %378 = arith.mulf %373, %356 : vector<8x32xf32>
    %379 = arith.mulf %371, %375 : vector<8x32xf32>
    %380 = arith.addf %378, %379 : vector<8x32xf32>
    %381 = math.tanh %380 : vector<8x32xf32>
    %382 = arith.mulf %377, %381 : vector<8x32xf32>
    %c48_116 = arith.constant 48 : index
    %c0_117 = arith.constant 0 : index
    %383 = vector.load %arg7[%c48_116, %c0_117] : memref<64x32xf32, #tpu.memory_space<vmem>>, vector<8x32xf32>
    tpu.vector_store %arg7[%c48_116, %c0_117], %382 {strides = array<i32>} : memref<64x32xf32, #tpu.memory_space<vmem>>, vector<8x32xf32>,
    %384 = vector.extract_strided_slice %217 {offsets = [56, 0], sizes = [8, 128], strides = [1, 1]} : vector<64x128xf32> to vector<8x128xf32>
    %385 = arith.truncf %382 : vector<8x32xf32> to vector<8x32xbf16>
    %cst_118 = arith.constant dense<0.000000e+00> : vector<8x128xf32>
    %386 = tpu.matmul %385, %208, %cst_118 {dimension_numbers = #tpu.dot_dimension_numbers<[1], [0], [0], [1], [0, 0, 1, 1], [], []>} : vector<8x32xbf16>, vector<32x128xbf16>, vector<8x128xf32> -> vector<8x128xf32>
    %387 = arith.addf %384, %386 : vector<8x128xf32>
    %388 = math.tanh %387 : vector<8x128xf32>
    %389 = arith.negf %387 : vector<8x128xf32>
    %390 = math.exp %389 : vector<8x128xf32>
    %cst_119 = arith.constant 1.000000e+00 : f32
    %391 = vector.broadcast %cst_119 : f32 to vector<8x128xf32>
    %392 = arith.addf %391, %390 : vector<8x128xf32>
    %393 = arith.divf %391, %392 : vector<8x128xf32>
    %394 = arith.select %5, %388, %393 : vector<8x128xi1>, vector<8x128xf32>
    %395 = vector.extract_strided_slice %394 {offsets = [0, 0], sizes = [8, 32], strides = [1, 1]} : vector<8x128xf32> to vector<8x32xf32>
    %c96_i32_120 = arith.constant 96 : i32
    %396 = tpu.dynamic_rotate %394 by %c96_i32_120 dim 1 : vector<8x128xf32>, i32 -> vector<8x128xf32>
    %397 = vector.extract_strided_slice %396 {offsets = [0, 0], sizes = [8, 32], strides = [1, 1]} : vector<8x128xf32> to vector<8x32xf32>
    %c64_i32_121 = arith.constant 64 : i32
    %398 = tpu.dynamic_rotate %394 by %c64_i32_121 dim 1 : vector<8x128xf32>, i32 -> vector<8x128xf32>
    %399 = vector.extract_strided_slice %398 {offsets = [0, 0], sizes = [8, 32], strides = [1, 1]} : vector<8x128xf32> to vector<8x32xf32>
    %c32_i32_122 = arith.constant 32 : i32
    %400 = tpu.dynamic_rotate %394 by %c32_i32_122 dim 1 : vector<8x128xf32>, i32 -> vector<8x128xf32>
    %401 = vector.extract_strided_slice %400 {offsets = [0, 0], sizes = [8, 32], strides = [1, 1]} : vector<8x128xf32> to vector<8x32xf32>
    %402 = arith.mulf %397, %380 : vector<8x32xf32>
    %403 = arith.mulf %395, %399 : vector<8x32xf32>
    %404 = arith.addf %402, %403 : vector<8x32xf32>
    %405 = math.tanh %404 : vector<8x32xf32>
    %406 = arith.mulf %401, %405 : vector<8x32xf32>
    %c56_123 = arith.constant 56 : index
    %c0_124 = arith.constant 0 : index
    %407 = vector.load %arg7[%c56_123, %c0_124] : memref<64x32xf32, #tpu.memory_space<vmem>>, vector<8x32xf32>
    tpu.vector_store %arg7[%c56_123, %c0_124], %406 {strides = array<i32>} : memref<64x32xf32, #tpu.memory_space<vmem>>, vector<8x32xf32>,
    %c2 = arith.constant 2 : index
    %c0_125 = arith.constant 0 : index
    %c0_126 = arith.constant 0 : index
    %408 = vector.load %arg2[%c2, %c0_125, %c0_126] : memref<3x32x128xbf16, #tpu.memory_space<vmem>>, vector<1x32x128xbf16>
    %409 = vector.shape_cast %408 : vector<1x32x128xbf16> to vector<32x128xbf16>
    %c2_127 = arith.constant 2 : index
    %c0_128 = arith.constant 0 : index
    %c0_129 = arith.constant 0 : index
    %410 = vector.load %arg3[%c2_127, %c0_128, %c0_129] : memref<3x1x128xf32, #tpu.memory_space<vmem>>, vector<1x1x128xf32>
    %411 = vector.shape_cast %410 : vector<1x1x128xf32> to vector<1x128xf32>
    %c0_130 = arith.constant 0 : index
    %c0_131 = arith.constant 0 : index
    %412 = vector.load %arg7[%c0_130, %c0_131] : memref<64x32xf32, #tpu.memory_space<vmem>>, vector<64x32xf32>
    %413 = arith.truncf %412 : vector<64x32xf32> to vector<64x32xbf16>
    %c2_132 = arith.constant 2 : index
    %c0_133 = arith.constant 0 : index
    %c0_134 = arith.constant 0 : index
    %414 = vector.load %arg1[%c2_132, %c0_133, %c0_134] : memref<3x32x128xbf16, #tpu.memory_space<vmem>>, vector<1x32x128xbf16>
    %415 = vector.shape_cast %414 : vector<1x32x128xbf16> to vector<32x128xbf16>
    %cst_135 = arith.constant dense<0.000000e+00> : vector<64x128xf32>
    %416 = tpu.matmul %413, %415, %cst_135 {dimension_numbers = #tpu.dot_dimension_numbers<[1], [0], [0], [1], [0, 0, 1, 1], [], []>} : vector<64x32xbf16>, vector<32x128xbf16>, vector<64x128xf32> -> vector<64x128xf32>
    %417 = vector.broadcast %411 : vector<1x128xf32> to vector<64x128xf32>
    %418 = arith.addf %416, %417 : vector<64x128xf32>
    %cst_136 = arith.constant 0.000000e+00 : f32
    %419 = vector.broadcast %cst_136 : f32 to vector<8x32xf32>
    %420 = vector.extract_strided_slice %418 {offsets = [0, 0], sizes = [8, 128], strides = [1, 1]} : vector<64x128xf32> to vector<8x128xf32>
    %421 = math.tanh %420 : vector<8x128xf32>
    %422 = arith.negf %420 : vector<8x128xf32>
    %423 = math.exp %422 : vector<8x128xf32>
    %cst_137 = arith.constant 1.000000e+00 : f32
    %424 = vector.broadcast %cst_137 : f32 to vector<8x128xf32>
    %425 = arith.addf %424, %423 : vector<8x128xf32>
    %426 = arith.divf %424, %425 : vector<8x128xf32>
    %427 = arith.select %5, %421, %426 : vector<8x128xi1>, vector<8x128xf32>
    %428 = vector.extract_strided_slice %427 {offsets = [0, 0], sizes = [8, 32], strides = [1, 1]} : vector<8x128xf32> to vector<8x32xf32>
    %c96_i32_138 = arith.constant 96 : i32
    %429 = tpu.dynamic_rotate %427 by %c96_i32_138 dim 1 : vector<8x128xf32>, i32 -> vector<8x128xf32>
    %430 = vector.extract_strided_slice %429 {offsets = [0, 0], sizes = [8, 32], strides = [1, 1]} : vector<8x128xf32> to vector<8x32xf32>
    %c64_i32_139 = arith.constant 64 : i32
    %431 = tpu.dynamic_rotate %427 by %c64_i32_139 dim 1 : vector<8x128xf32>, i32 -> vector<8x128xf32>
    %432 = vector.extract_strided_slice %431 {offsets = [0, 0], sizes = [8, 32], strides = [1, 1]} : vector<8x128xf32> to vector<8x32xf32>
    %c32_i32_140 = arith.constant 32 : i32
    %433 = tpu.dynamic_rotate %427 by %c32_i32_140 dim 1 : vector<8x128xf32>, i32 -> vector<8x128xf32>
    %434 = vector.extract_strided_slice %433 {offsets = [0, 0], sizes = [8, 32], strides = [1, 1]} : vector<8x128xf32> to vector<8x32xf32>
    %435 = arith.mulf %430, %419 : vector<8x32xf32>
    %436 = arith.mulf %428, %432 : vector<8x32xf32>
    %437 = arith.addf %435, %436 : vector<8x32xf32>
    %438 = math.tanh %437 : vector<8x32xf32>
    %439 = arith.mulf %434, %438 : vector<8x32xf32>
    %440 = vector.extract_strided_slice %418 {offsets = [8, 0], sizes = [8, 128], strides = [1, 1]} : vector<64x128xf32> to vector<8x128xf32>
    %441 = arith.truncf %439 : vector<8x32xf32> to vector<8x32xbf16>
    %cst_141 = arith.constant dense<0.000000e+00> : vector<8x128xf32>
    %442 = tpu.matmul %441, %409, %cst_141 {dimension_numbers = #tpu.dot_dimension_numbers<[1], [0], [0], [1], [0, 0, 1, 1], [], []>} : vector<8x32xbf16>, vector<32x128xbf16>, vector<8x128xf32> -> vector<8x128xf32>
    %443 = arith.addf %440, %442 : vector<8x128xf32>
    %444 = math.tanh %443 : vector<8x128xf32>
    %445 = arith.negf %443 : vector<8x128xf32>
    %446 = math.exp %445 : vector<8x128xf32>
    %cst_142 = arith.constant 1.000000e+00 : f32
    %447 = vector.broadcast %cst_142 : f32 to vector<8x128xf32>
    %448 = arith.addf %447, %446 : vector<8x128xf32>
    %449 = arith.divf %447, %448 : vector<8x128xf32>
    %450 = arith.select %5, %444, %449 : vector<8x128xi1>, vector<8x128xf32>
    %451 = vector.extract_strided_slice %450 {offsets = [0, 0], sizes = [8, 32], strides = [1, 1]} : vector<8x128xf32> to vector<8x32xf32>
    %c96_i32_143 = arith.constant 96 : i32
    %452 = tpu.dynamic_rotate %450 by %c96_i32_143 dim 1 : vector<8x128xf32>, i32 -> vector<8x128xf32>
    %453 = vector.extract_strided_slice %452 {offsets = [0, 0], sizes = [8, 32], strides = [1, 1]} : vector<8x128xf32> to vector<8x32xf32>
    %c64_i32_144 = arith.constant 64 : i32
    %454 = tpu.dynamic_rotate %450 by %c64_i32_144 dim 1 : vector<8x128xf32>, i32 -> vector<8x128xf32>
    %455 = vector.extract_strided_slice %454 {offsets = [0, 0], sizes = [8, 32], strides = [1, 1]} : vector<8x128xf32> to vector<8x32xf32>
    %c32_i32_145 = arith.constant 32 : i32
    %456 = tpu.dynamic_rotate %450 by %c32_i32_145 dim 1 : vector<8x128xf32>, i32 -> vector<8x128xf32>
    %457 = vector.extract_strided_slice %456 {offsets = [0, 0], sizes = [8, 32], strides = [1, 1]} : vector<8x128xf32> to vector<8x32xf32>
    %458 = arith.mulf %453, %437 : vector<8x32xf32>
    %459 = arith.mulf %451, %455 : vector<8x32xf32>
    %460 = arith.addf %458, %459 : vector<8x32xf32>
    %461 = math.tanh %460 : vector<8x32xf32>
    %462 = arith.mulf %457, %461 : vector<8x32xf32>
    %463 = vector.extract_strided_slice %418 {offsets = [16, 0], sizes = [8, 128], strides = [1, 1]} : vector<64x128xf32> to vector<8x128xf32>
    %464 = arith.truncf %462 : vector<8x32xf32> to vector<8x32xbf16>
    %cst_146 = arith.constant dense<0.000000e+00> : vector<8x128xf32>
    %465 = tpu.matmul %464, %409, %cst_146 {dimension_numbers = #tpu.dot_dimension_numbers<[1], [0], [0], [1], [0, 0, 1, 1], [], []>} : vector<8x32xbf16>, vector<32x128xbf16>, vector<8x128xf32> -> vector<8x128xf32>
    %466 = arith.addf %463, %465 : vector<8x128xf32>
    %467 = math.tanh %466 : vector<8x128xf32>
    %468 = arith.negf %466 : vector<8x128xf32>
    %469 = math.exp %468 : vector<8x128xf32>
    %cst_147 = arith.constant 1.000000e+00 : f32
    %470 = vector.broadcast %cst_147 : f32 to vector<8x128xf32>
    %471 = arith.addf %470, %469 : vector<8x128xf32>
    %472 = arith.divf %470, %471 : vector<8x128xf32>
    %473 = arith.select %5, %467, %472 : vector<8x128xi1>, vector<8x128xf32>
    %474 = vector.extract_strided_slice %473 {offsets = [0, 0], sizes = [8, 32], strides = [1, 1]} : vector<8x128xf32> to vector<8x32xf32>
    %c96_i32_148 = arith.constant 96 : i32
    %475 = tpu.dynamic_rotate %473 by %c96_i32_148 dim 1 : vector<8x128xf32>, i32 -> vector<8x128xf32>
    %476 = vector.extract_strided_slice %475 {offsets = [0, 0], sizes = [8, 32], strides = [1, 1]} : vector<8x128xf32> to vector<8x32xf32>
    %c64_i32_149 = arith.constant 64 : i32
    %477 = tpu.dynamic_rotate %473 by %c64_i32_149 dim 1 : vector<8x128xf32>, i32 -> vector<8x128xf32>
    %478 = vector.extract_strided_slice %477 {offsets = [0, 0], sizes = [8, 32], strides = [1, 1]} : vector<8x128xf32> to vector<8x32xf32>
    %c32_i32_150 = arith.constant 32 : i32
    %479 = tpu.dynamic_rotate %473 by %c32_i32_150 dim 1 : vector<8x128xf32>, i32 -> vector<8x128xf32>
    %480 = vector.extract_strided_slice %479 {offsets = [0, 0], sizes = [8, 32], strides = [1, 1]} : vector<8x128xf32> to vector<8x32xf32>
    %481 = arith.mulf %476, %460 : vector<8x32xf32>
    %482 = arith.mulf %474, %478 : vector<8x32xf32>
    %483 = arith.addf %481, %482 : vector<8x32xf32>
    %484 = math.tanh %483 : vector<8x32xf32>
    %485 = arith.mulf %480, %484 : vector<8x32xf32>
    %486 = vector.extract_strided_slice %418 {offsets = [24, 0], sizes = [8, 128], strides = [1, 1]} : vector<64x128xf32> to vector<8x128xf32>
    %487 = arith.truncf %485 : vector<8x32xf32> to vector<8x32xbf16>
    %cst_151 = arith.constant dense<0.000000e+00> : vector<8x128xf32>
    %488 = tpu.matmul %487, %409, %cst_151 {dimension_numbers = #tpu.dot_dimension_numbers<[1], [0], [0], [1], [0, 0, 1, 1], [], []>} : vector<8x32xbf16>, vector<32x128xbf16>, vector<8x128xf32> -> vector<8x128xf32>
    %489 = arith.addf %486, %488 : vector<8x128xf32>
    %490 = math.tanh %489 : vector<8x128xf32>
    %491 = arith.negf %489 : vector<8x128xf32>
    %492 = math.exp %491 : vector<8x128xf32>
    %cst_152 = arith.constant 1.000000e+00 : f32
    %493 = vector.broadcast %cst_152 : f32 to vector<8x128xf32>
    %494 = arith.addf %493, %492 : vector<8x128xf32>
    %495 = arith.divf %493, %494 : vector<8x128xf32>
    %496 = arith.select %5, %490, %495 : vector<8x128xi1>, vector<8x128xf32>
    %497 = vector.extract_strided_slice %496 {offsets = [0, 0], sizes = [8, 32], strides = [1, 1]} : vector<8x128xf32> to vector<8x32xf32>
    %c96_i32_153 = arith.constant 96 : i32
    %498 = tpu.dynamic_rotate %496 by %c96_i32_153 dim 1 : vector<8x128xf32>, i32 -> vector<8x128xf32>
    %499 = vector.extract_strided_slice %498 {offsets = [0, 0], sizes = [8, 32], strides = [1, 1]} : vector<8x128xf32> to vector<8x32xf32>
    %c64_i32_154 = arith.constant 64 : i32
    %500 = tpu.dynamic_rotate %496 by %c64_i32_154 dim 1 : vector<8x128xf32>, i32 -> vector<8x128xf32>
    %501 = vector.extract_strided_slice %500 {offsets = [0, 0], sizes = [8, 32], strides = [1, 1]} : vector<8x128xf32> to vector<8x32xf32>
    %c32_i32_155 = arith.constant 32 : i32
    %502 = tpu.dynamic_rotate %496 by %c32_i32_155 dim 1 : vector<8x128xf32>, i32 -> vector<8x128xf32>
    %503 = vector.extract_strided_slice %502 {offsets = [0, 0], sizes = [8, 32], strides = [1, 1]} : vector<8x128xf32> to vector<8x32xf32>
    %504 = arith.mulf %499, %483 : vector<8x32xf32>
    %505 = arith.mulf %497, %501 : vector<8x32xf32>
    %506 = arith.addf %504, %505 : vector<8x32xf32>
    %507 = math.tanh %506 : vector<8x32xf32>
    %508 = arith.mulf %503, %507 : vector<8x32xf32>
    %509 = vector.extract_strided_slice %418 {offsets = [32, 0], sizes = [8, 128], strides = [1, 1]} : vector<64x128xf32> to vector<8x128xf32>
    %510 = arith.truncf %508 : vector<8x32xf32> to vector<8x32xbf16>
    %cst_156 = arith.constant dense<0.000000e+00> : vector<8x128xf32>
    %511 = tpu.matmul %510, %409, %cst_156 {dimension_numbers = #tpu.dot_dimension_numbers<[1], [0], [0], [1], [0, 0, 1, 1], [], []>} : vector<8x32xbf16>, vector<32x128xbf16>, vector<8x128xf32> -> vector<8x128xf32>
    %512 = arith.addf %509, %511 : vector<8x128xf32>
    %513 = math.tanh %512 : vector<8x128xf32>
    %514 = arith.negf %512 : vector<8x128xf32>
    %515 = math.exp %514 : vector<8x128xf32>
    %cst_157 = arith.constant 1.000000e+00 : f32
    %516 = vector.broadcast %cst_157 : f32 to vector<8x128xf32>
    %517 = arith.addf %516, %515 : vector<8x128xf32>
    %518 = arith.divf %516, %517 : vector<8x128xf32>
    %519 = arith.select %5, %513, %518 : vector<8x128xi1>, vector<8x128xf32>
    %520 = vector.extract_strided_slice %519 {offsets = [0, 0], sizes = [8, 32], strides = [1, 1]} : vector<8x128xf32> to vector<8x32xf32>
    %c96_i32_158 = arith.constant 96 : i32
    %521 = tpu.dynamic_rotate %519 by %c96_i32_158 dim 1 : vector<8x128xf32>, i32 -> vector<8x128xf32>
    %522 = vector.extract_strided_slice %521 {offsets = [0, 0], sizes = [8, 32], strides = [1, 1]} : vector<8x128xf32> to vector<8x32xf32>
    %c64_i32_159 = arith.constant 64 : i32
    %523 = tpu.dynamic_rotate %519 by %c64_i32_159 dim 1 : vector<8x128xf32>, i32 -> vector<8x128xf32>
    %524 = vector.extract_strided_slice %523 {offsets = [0, 0], sizes = [8, 32], strides = [1, 1]} : vector<8x128xf32> to vector<8x32xf32>
    %c32_i32_160 = arith.constant 32 : i32
    %525 = tpu.dynamic_rotate %519 by %c32_i32_160 dim 1 : vector<8x128xf32>, i32 -> vector<8x128xf32>
    %526 = vector.extract_strided_slice %525 {offsets = [0, 0], sizes = [8, 32], strides = [1, 1]} : vector<8x128xf32> to vector<8x32xf32>
    %527 = arith.mulf %522, %506 : vector<8x32xf32>
    %528 = arith.mulf %520, %524 : vector<8x32xf32>
    %529 = arith.addf %527, %528 : vector<8x32xf32>
    %530 = math.tanh %529 : vector<8x32xf32>
    %531 = arith.mulf %526, %530 : vector<8x32xf32>
    %532 = vector.extract_strided_slice %418 {offsets = [40, 0], sizes = [8, 128], strides = [1, 1]} : vector<64x128xf32> to vector<8x128xf32>
    %533 = arith.truncf %531 : vector<8x32xf32> to vector<8x32xbf16>
    %cst_161 = arith.constant dense<0.000000e+00> : vector<8x128xf32>
    %534 = tpu.matmul %533, %409, %cst_161 {dimension_numbers = #tpu.dot_dimension_numbers<[1], [0], [0], [1], [0, 0, 1, 1], [], []>} : vector<8x32xbf16>, vector<32x128xbf16>, vector<8x128xf32> -> vector<8x128xf32>
    %535 = arith.addf %532, %534 : vector<8x128xf32>
    %536 = math.tanh %535 : vector<8x128xf32>
    %537 = arith.negf %535 : vector<8x128xf32>
    %538 = math.exp %537 : vector<8x128xf32>
    %cst_162 = arith.constant 1.000000e+00 : f32
    %539 = vector.broadcast %cst_162 : f32 to vector<8x128xf32>
    %540 = arith.addf %539, %538 : vector<8x128xf32>
    %541 = arith.divf %539, %540 : vector<8x128xf32>
    %542 = arith.select %5, %536, %541 : vector<8x128xi1>, vector<8x128xf32>
    %543 = vector.extract_strided_slice %542 {offsets = [0, 0], sizes = [8, 32], strides = [1, 1]} : vector<8x128xf32> to vector<8x32xf32>
    %c96_i32_163 = arith.constant 96 : i32
    %544 = tpu.dynamic_rotate %542 by %c96_i32_163 dim 1 : vector<8x128xf32>, i32 -> vector<8x128xf32>
    %545 = vector.extract_strided_slice %544 {offsets = [0, 0], sizes = [8, 32], strides = [1, 1]} : vector<8x128xf32> to vector<8x32xf32>
    %c64_i32_164 = arith.constant 64 : i32
    %546 = tpu.dynamic_rotate %542 by %c64_i32_164 dim 1 : vector<8x128xf32>, i32 -> vector<8x128xf32>
    %547 = vector.extract_strided_slice %546 {offsets = [0, 0], sizes = [8, 32], strides = [1, 1]} : vector<8x128xf32> to vector<8x32xf32>
    %c32_i32_165 = arith.constant 32 : i32
    %548 = tpu.dynamic_rotate %542 by %c32_i32_165 dim 1 : vector<8x128xf32>, i32 -> vector<8x128xf32>
    %549 = vector.extract_strided_slice %548 {offsets = [0, 0], sizes = [8, 32], strides = [1, 1]} : vector<8x128xf32> to vector<8x32xf32>
    %550 = arith.mulf %545, %529 : vector<8x32xf32>
    %551 = arith.mulf %543, %547 : vector<8x32xf32>
    %552 = arith.addf %550, %551 : vector<8x32xf32>
    %553 = math.tanh %552 : vector<8x32xf32>
    %554 = arith.mulf %549, %553 : vector<8x32xf32>
    %555 = vector.extract_strided_slice %418 {offsets = [48, 0], sizes = [8, 128], strides = [1, 1]} : vector<64x128xf32> to vector<8x128xf32>
    %556 = arith.truncf %554 : vector<8x32xf32> to vector<8x32xbf16>
    %cst_166 = arith.constant dense<0.000000e+00> : vector<8x128xf32>
    %557 = tpu.matmul %556, %409, %cst_166 {dimension_numbers = #tpu.dot_dimension_numbers<[1], [0], [0], [1], [0, 0, 1, 1], [], []>} : vector<8x32xbf16>, vector<32x128xbf16>, vector<8x128xf32> -> vector<8x128xf32>
    %558 = arith.addf %555, %557 : vector<8x128xf32>
    %559 = math.tanh %558 : vector<8x128xf32>
    %560 = arith.negf %558 : vector<8x128xf32>
    %561 = math.exp %560 : vector<8x128xf32>
    %cst_167 = arith.constant 1.000000e+00 : f32
    %562 = vector.broadcast %cst_167 : f32 to vector<8x128xf32>
    %563 = arith.addf %562, %561 : vector<8x128xf32>
    %564 = arith.divf %562, %563 : vector<8x128xf32>
    %565 = arith.select %5, %559, %564 : vector<8x128xi1>, vector<8x128xf32>
    %566 = vector.extract_strided_slice %565 {offsets = [0, 0], sizes = [8, 32], strides = [1, 1]} : vector<8x128xf32> to vector<8x32xf32>
    %c96_i32_168 = arith.constant 96 : i32
    %567 = tpu.dynamic_rotate %565 by %c96_i32_168 dim 1 : vector<8x128xf32>, i32 -> vector<8x128xf32>
    %568 = vector.extract_strided_slice %567 {offsets = [0, 0], sizes = [8, 32], strides = [1, 1]} : vector<8x128xf32> to vector<8x32xf32>
    %c64_i32_169 = arith.constant 64 : i32
    %569 = tpu.dynamic_rotate %565 by %c64_i32_169 dim 1 : vector<8x128xf32>, i32 -> vector<8x128xf32>
    %570 = vector.extract_strided_slice %569 {offsets = [0, 0], sizes = [8, 32], strides = [1, 1]} : vector<8x128xf32> to vector<8x32xf32>
    %c32_i32_170 = arith.constant 32 : i32
    %571 = tpu.dynamic_rotate %565 by %c32_i32_170 dim 1 : vector<8x128xf32>, i32 -> vector<8x128xf32>
    %572 = vector.extract_strided_slice %571 {offsets = [0, 0], sizes = [8, 32], strides = [1, 1]} : vector<8x128xf32> to vector<8x32xf32>
    %573 = arith.mulf %568, %552 : vector<8x32xf32>
    %574 = arith.mulf %566, %570 : vector<8x32xf32>
    %575 = arith.addf %573, %574 : vector<8x32xf32>
    %576 = math.tanh %575 : vector<8x32xf32>
    %577 = arith.mulf %572, %576 : vector<8x32xf32>
    %578 = vector.extract_strided_slice %418 {offsets = [56, 0], sizes = [8, 128], strides = [1, 1]} : vector<64x128xf32> to vector<8x128xf32>
    %579 = arith.truncf %577 : vector<8x32xf32> to vector<8x32xbf16>
    %cst_171 = arith.constant dense<0.000000e+00> : vector<8x128xf32>
    %580 = tpu.matmul %579, %409, %cst_171 {dimension_numbers = #tpu.dot_dimension_numbers<[1], [0], [0], [1], [0, 0, 1, 1], [], []>} : vector<8x32xbf16>, vector<32x128xbf16>, vector<8x128xf32> -> vector<8x128xf32>
    %581 = arith.addf %578, %580 : vector<8x128xf32>
    %582 = math.tanh %581 : vector<8x128xf32>
    %583 = arith.negf %581 : vector<8x128xf32>
    %584 = math.exp %583 : vector<8x128xf32>
    %cst_172 = arith.constant 1.000000e+00 : f32
    %585 = vector.broadcast %cst_172 : f32 to vector<8x128xf32>
    %586 = arith.addf %585, %584 : vector<8x128xf32>
    %587 = arith.divf %585, %586 : vector<8x128xf32>
    %588 = arith.select %5, %582, %587 : vector<8x128xi1>, vector<8x128xf32>
    %589 = vector.extract_strided_slice %588 {offsets = [0, 0], sizes = [8, 32], strides = [1, 1]} : vector<8x128xf32> to vector<8x32xf32>
    %c96_i32_173 = arith.constant 96 : i32
    %590 = tpu.dynamic_rotate %588 by %c96_i32_173 dim 1 : vector<8x128xf32>, i32 -> vector<8x128xf32>
    %591 = vector.extract_strided_slice %590 {offsets = [0, 0], sizes = [8, 32], strides = [1, 1]} : vector<8x128xf32> to vector<8x32xf32>
    %c64_i32_174 = arith.constant 64 : i32
    %592 = tpu.dynamic_rotate %588 by %c64_i32_174 dim 1 : vector<8x128xf32>, i32 -> vector<8x128xf32>
    %593 = vector.extract_strided_slice %592 {offsets = [0, 0], sizes = [8, 32], strides = [1, 1]} : vector<8x128xf32> to vector<8x32xf32>
    %c32_i32_175 = arith.constant 32 : i32
    %594 = tpu.dynamic_rotate %588 by %c32_i32_175 dim 1 : vector<8x128xf32>, i32 -> vector<8x128xf32>
    %595 = vector.extract_strided_slice %594 {offsets = [0, 0], sizes = [8, 32], strides = [1, 1]} : vector<8x128xf32> to vector<8x32xf32>
    %596 = arith.mulf %591, %575 : vector<8x32xf32>
    %597 = arith.mulf %589, %593 : vector<8x32xf32>
    %598 = arith.addf %596, %597 : vector<8x32xf32>
    %599 = math.tanh %598 : vector<8x32xf32>
    %600 = arith.mulf %595, %599 : vector<8x32xf32>
    %601 = arith.truncf %600 : vector<8x32xf32> to vector<8x32xbf16>
    %c0_176 = arith.constant 0 : index
    %c0_177 = arith.constant 0 : index
    %602 = vector.load %arg4[%c0_176, %c0_177] : memref<32x128xbf16, #tpu.memory_space<vmem>>, vector<32x128xbf16>
    %cst_178 = arith.constant dense<0.000000e+00> : vector<8x128xf32>
    %603 = tpu.matmul %601, %602, %cst_178 {dimension_numbers = #tpu.dot_dimension_numbers<[1], [0], [0], [1], [0, 0, 1, 1], [], []>} : vector<8x32xbf16>, vector<32x128xbf16>, vector<8x128xf32> -> vector<8x128xf32>
    %c0_179 = arith.constant 0 : index
    %c0_180 = arith.constant 0 : index
    %604 = vector.load %arg5[%c0_179, %c0_180] : memref<1x128xf32, #tpu.memory_space<vmem>>, vector<1x128xf32>
    %605 = vector.broadcast %604 : vector<1x128xf32> to vector<8x128xf32>
    %606 = arith.addf %603, %605 : vector<8x128xf32>
    %c0_181 = arith.constant 0 : index
    %c0_182 = arith.constant 0 : index
    %607 = vector.load %arg6[%c0_181, %c0_182] : memref<8x128xf32, #tpu.memory_space<vmem>>, vector<8x128xf32>
    tpu.vector_store %arg6[%c0_181, %c0_182], %606 {strides = array<i32>} : memref<8x128xf32, #tpu.memory_space<vmem>>, vector<8x128xf32>,
    return
  }
}

</mosaic_0001>

<bundles_post_ra>
// kernel: tpu_custom_call.1
= control target key start
LH: loop header
LB: loop body
LE: loop exit
PB: predicated region body
PF: predicated region fallthrough
CT: control target
= control target key end

     0   :  { %11 = vsyncpa [#allocation4], 0  ;;  %s3121_s0 = inlined_call_operand.vmem [shape: f32[64,32], index: 0, kind: input, shape index: {}]   ;;  %s3122_s1 = inlined_call_operand.vmem [shape: bf16[3,32,128], index: 1, kind: input, shape index: {}]   ;;  %s3123_s2 = inlined_call_operand.vmem [shape: bf16[3,32,128], index: 2, kind: input, shape index: {}]   ;;  %s3124_s3 = inlined_call_operand.vmem [shape: f32[3,1,128], index: 3, kind: input, shape index: {}]   ;;  %s3125_s4 = inlined_call_operand.hbm [shape: bf16[32,128], index: 4, kind: input, shape index: {}]   ;;  %s3126_s5 = inlined_call_operand.vmem [shape: f32[1,128], index: 5, kind: input, shape index: {}]   ;;  %s3127_s6 = inlined_call_operand.hbm [shape: f32[8,128], index: 6, kind: output, shape index: {}]  }
   0x1   :  { %12 = vsyncpa [#allocation5], 0  ;;  %s2583_s21 = smov [#allocation3]  }
   0x2   :  { %s26_s22 = sshll.u32 %s2583_s21, 4  ;;  %s27_s22 = int_to_ptr.vmem [resolvable:$true] %s26_s22 }
   0x3   :  { %s2547_s23 = scalar_lea.vmem %s27_s22, 256  ;;  %p2552_p1 = scmp.lt.s32.totalorder %s27_s22, %s27_s22 }
   0x4   :  { %p2548_p0 = scmp.ne.s32.totalorder %s27_s22, %s2547_s23  ;;  %p2553_p2 = scmp.lt.s32.totalorder %s2547_s23, %s2547_s23 }
   0x6   :  { %p2554_p3 = por %p2553_p2, %p2552_p1 }
   0x8   :  { %p2555_p4 = pnand %p2554_p3, %p2548_p0 }
   0xa   :  { %2558 = shalt.err (!%p2555_p4)
}
   0xb   :  { %s2584_s24 = smov 64   ;;  %s2585_s25 = smov 4  }
   0xc   :  { %32 = dma.hbm_to_vmem [thread:$0]  %s3125_s4, 256, %s27_s22, [#allocation4], %s2584_s24, %s2584_s24, %s2585_s25  }
   0xd   :  { %2579 = dma.done.wait [#allocation4], 256  }
   0xe   :  { %2580 = vsyncadd [#allocation4], 4294967040  ;;  %v2333_v0 = vld [vmem:[%s3122_s1 + $0x8] sm:$0xff]   ;;  %v2334_v1 = vld [vmem:[%s3122_s1] sm:$0xff]   ;;  %vm83_vm0 = vcmask 261120   ;;  %v39_v15 = vlaneseq  ;;  %v2586_v19 = vmov 0.0  }
   0xf   :  { %2113 = vmatprep.subr.bf16.mxu0 %v2333_v0  ;;  %v49_v2 = vld [vmem:[%s3121_s0] sm:$0xff]  ;;  %v50_v3 = vld [vmem:[%s3121_s0 + $0x8] sm:$0xff]  ;;  %v51_v4 = vld [vmem:[%s3121_s0 + $0x10] sm:$0xff]  ;;  %2125 = vmatprep.subr.bf16.mxu1 %v2586_v19  ;;  %vm2587_vm4 = vmmov 0   ;;  %s2588_s21 = smov 32   ;;  %s2589_s22 = smov 96  }
  0x10   :  { %2114 = vmatpush3.bf16.msra.mxu0 %v2333_v0  ;;  %v57_v5 = vpack.c.bf16 %v50_v3, %v49_v2  ;;  %v52_v6 = vld [vmem:[%s3121_s0 + $0x18] sm:$0xff]  ;;  %v2656_v9 = vld [vmem:[%s3124_s3] ss:$0 sm:$0xff]  ;;  %v40_v16 = vand.u32 127, %v39_v15  ;;  %v2662_v17 = vld [vmem:[%s3123_s2 + $0x8] sm:$0xff]   ;;  %2129 = vmatprep.mubr.msk.bf16.mxu1 %vm2587_vm4, %v2586_v19 }
  0x11   :  { %2115 = vmatprep.subr.bf16.mxu0 %v2334_v1  ;;  %v58_v7 = vpack.c.bf16 %v52_v6, %v51_v4  ;;  %2126 = vmatpush3.bf16.msra.mxu1 %v2662_v17  ;;  %v2675_v21 = vld [vmem:[%s3123_s2] sm:$0xff]   ;;  %v54_v2 = vld [vmem:[%s3121_s0 + $0x28] sm:$0xff]  ;;  %v55_v4 = vld [vmem:[%s3121_s0 + $0x30] sm:$0xff] }
  0x12   :  { %2117 = vmatprep.mubr.msk.bf16.mxu0 %vm83_vm0, %v57_v5  ;;  %vm41_vm1 = vcmp.ge.s32.totalorder %v40_v16, 64  ;;  %vm42_vm2 = vcmp.lt.s32.totalorder %v40_v16, 96  ;;  %2127 = vmatprep.subr.bf16.mxu1 %v2586_v19  ;;  %v56_v5 = vld [vmem:[%s3121_s0 + $0x38] sm:$0xff] }
  0x13   :  { %vm2664_vm3 = vmand %vm41_vm1, %vm42_vm2  ;;  %v60_v6 = vpack.c.bf16 %v56_v5, %v55_v4 }
  0x14   :  { %2116 = vmatpush3.bf16.msra.mxu0 %v2334_v1  ;;  %v53_v1 = vld [vmem:[%s3121_s0 + $0x20] sm:$0xff] }
  0x15   :  { %2141 = vmatprep.subr.bf16.mxu0 %v2586_v19  ;;  %2128 = vmatpush3.bf16.msra.mxu1 %v2675_v21  ;;  %v59_v3 = vpack.c.bf16 %v54_v2, %v53_v1 }
  0x16   :  { %2133 = vmatprep.subr.bf16.mxu1 %v2586_v19 }
  0x17   :  { %2118 = vmatmul.mubr.msk.bf16.vlgmr.msra.gmra.mxu0 %vm83_vm0, %v58_v7 }
  0x18   :  { %2142 = vmatpush3.bf16.msra.mxu0 %v2662_v17  ;;  %2121 = vmatprep.mubr.msk.bf16.mxu0 %vm83_vm0, %v59_v3 }
  0x19   :  { %2143 = vmatprep.subr.bf16.mxu0 %v2586_v19 }
  0x1c   :  { %2144 = vmatpush3.bf16.msra.mxu0 %v2675_v21 }
  0x1d   :  { %2157 = vmatprep.subr.bf16.mxu0 %v2586_v19 }
  0x1f   :  { %2122 = vmatmul.mubr.msk.bf16.gmra.mxu0 %vm83_vm0, %v60_v6 }
  0x20   :  { %2145 = vmatprep.mubr.msk.bf16.mxu0 %vm2587_vm4, %v2586_v19 }
  0xd7   :  { %v2651_v8 = vpop.f32.mrf.mxu0 }
  0xd8   :  { %v139_v56 = vadd.f32 %v2651_v8, %v2656_v9 }
  0xd9   :  { %v130_v10 = vpop.f32.mrf.mxu0 }
  0xda   :  { %v131_v11 = vadd.f32 %v2656_v9, %v130_v10 }
  0xdb   :  { %v2698_v33 = vpop.f32.mrf.mxu0 }
  0xdc   :  { %v1942_v12 = vmul.f32 -1.442695, %v131_v11 }
  0xdd   :  { %v133_v34 = vpop.f32.mrf.mxu0 }
  0xde   :  { %2347 = vpow2.f32 %v1942_v12  ;;  %v134_v35 = vadd.f32 %v2656_v9, %v133_v34 }
  0xdf   :  { %2349 = vtanh.f32 %v131_v11 }
  0xeb   :  { %v2348_v13 = vpop.eup %2347 }
  0xec   :  { %v165_v14 = vadd.f32 1.0, %v2348_v13  ;;  %v2350_v20 = vpop.eup %2349 }
  0xee   :  { %2351 = vrcp.f32 %v165_v14 }
  0xfb   :  { %v2352_v22 = vpop.eup %2351 }
  0xfc   :  { %v168_v23 = vsel %vm2664_vm3, %v2350_v20, %v2352_v22 }
  0xfd   :  { %173 = vrot.lane.b32.xlu1 %v168_v23, %s2588_s21  ;;  %169 = vrot.lane.b32.xlu0 %v168_v23, %s2589_s22 }
 0x101   :  { %171 = vrot.lane.b32.xlu0 %v168_v23, %s2584_s24 }
 0x16f   :  { %v170_v24 = vpop.permute.xlu0 %169  ;;  %v174_v30 = vpop.permute.xlu1 %173 }
 0x170   :  { %v175_v26 = vmul.f32 0.0, %v170_v24  ;;  %v2745_v24 = vpop.f32.mrf.mxu0 }
 0x173   :  { %v172_v25 = vpop.permute.xlu0 %171 }
 0x174   :  { %v176_v27 = vmul.f32 %v172_v25, %v168_v23  ;;  %v146_v25 = vpop.f32.mrf.mxu0 }
 0x176   :  { %v177_v28 = vadd.f32 %v176_v27, %v175_v26  ;;  %v2747_v26 = vpop.f32.mrf.mxu0 }
 0x178   :  { %2353 = vtanh.f32 %v177_v28  ;;  %v2749_v27 = vpop.f32.mrf.mxu0 }
 0x179   :  { %v150_v6 = vadd.f32 %v2656_v9, %v2749_v27 }
 0x185   :  { %v2354_v29 = vpop.eup %2353 }
 0x186   :  { %v179_v31 = vmul.f32 %v2354_v29, %v174_v30 }
 0x188   :  { %180 = vst.msk [vmem:[#allocation2] sm:$0xff] %vm83_vm0, %v179_v31  ;;  %v181_v32 = vpack.c.bf16 %v179_v31, %v179_v31 }
 0x18a   :  { %2130 = vmatmul.mubr.msk.bf16.vlgmr.msra.gmra.mxu1 %vm83_vm0, %v181_v32 }
 0x18b   :  { %2134 = vmatpush3.bf16.msra.mxu1 %v2662_v17  ;;  %2137 = vmatprep.mubr.msk.bf16.mxu1 %vm2587_vm4, %v2586_v19 }
 0x18c   :  { %2135 = vmatprep.subr.bf16.mxu1 %v2586_v19 }
 0x18f   :  { %2136 = vmatpush3.bf16.msra.mxu1 %v2675_v21 }
 0x190   :  { %2149 = vmatprep.subr.bf16.mxu1 %v2586_v19 }
 0x24a   :  { %v231_v36 = vpop.f32.mrf.mxu1 }
 0x24b   :  { %v237_v37 = vadd.f32 %v231_v36, %v134_v35 }
 0x24c   :  { %v2131_v38 = vpop.f32.mrf.mxu1 }
 0x24d   :  { %v1946_v39 = vmul.f32 -1.442695, %v237_v37 }
 0x24e   :  { %v234_v40 = vpop.f32.mrf.mxu1 }
 0x24f   :  { %2355 = vpow2.f32 %v1946_v39 }
 0x250   :  { %v2132_v41 = vpop.f32.mrf.mxu1  ;;  %2357 = vtanh.f32 %v237_v37 }
 0x25c   :  { %v2356_v42 = vpop.eup %2355 }
 0x25d   :  { %v242_v43 = vadd.f32 1.0, %v2356_v42  ;;  %v2358_v44 = vpop.eup %2357 }
 0x25f   :  { %2359 = vrcp.f32 %v242_v43 }
 0x26c   :  { %v2360_v45 = vpop.eup %2359 }
 0x26d   :  { %v245_v46 = vsel %vm2664_vm3, %v2358_v44, %v2360_v45 }
 0x26e   :  { %248 = vrot.lane.b32.xlu0 %v245_v46, %s2584_s24  ;;  %246 = vrot.lane.b32.xlu1 %v245_v46, %s2589_s22 }
 0x272   :  { %250 = vrot.lane.b32.xlu1 %v245_v46, %s2588_s21 }
 0x2e0   :  { %v249_v47 = vpop.permute.xlu0 %248  ;;  %v247_v48 = vpop.permute.xlu1 %246 }
 0x2e1   :  { %v253_v49 = vmul.f32 %v249_v47, %v245_v46  ;;  %v252_v50 = vmul.f32 %v247_v48, %v177_v28  ;;  %v142_v28 = vadd.f32 %v2698_v33, %v2656_v9 }
 0x2e3   :  { %v254_v51 = vadd.f32 %v253_v49, %v252_v50  ;;  %v147_v49 = vadd.f32 %v2656_v9, %v146_v25 }
 0x2e4   :  { %v251_v53 = vpop.permute.xlu1 %250 }
 0x2e5   :  { %2361 = vtanh.f32 %v254_v51 }
 0x2f2   :  { %v2362_v52 = vpop.eup %2361 }
 0x2f3   :  { %v256_v54 = vmul.f32 %v2362_v52, %v251_v53 }
 0x2f5   :  { %257 = vst.msk [vmem:[#allocation2 + $0x8] sm:$0xff] %vm83_vm0, %v256_v54  ;;  %v258_v55 = vpack.c.bf16 %v256_v54, %v256_v54 }
 0x2f7   :  { %2138 = vmatmul.mubr.msk.bf16.vlgmr.msra.gmra.mxu1 %vm83_vm0, %v258_v55 }
 0x2f8   :  { %2150 = vmatpush3.bf16.msra.mxu1 %v2662_v17  ;;  %2153 = vmatprep.mubr.msk.bf16.mxu1 %vm2587_vm4, %v2586_v19 }
 0x2f9   :  { %2151 = vmatprep.subr.bf16.mxu1 %v2586_v19 }
 0x2fc   :  { %2152 = vmatpush3.bf16.msra.mxu1 %v2675_v21 }
 0x2fd   :  { %2165 = vmatprep.subr.bf16.mxu1 %v2586_v19 }
 0x3b7   :  { %v296_v57 = vpop.f32.mrf.mxu1 }
 0x3b8   :  { %v302_v58 = vadd.f32 %v296_v57, %v139_v56 }
 0x3b9   :  { %v2139_v59 = vpop.f32.mrf.mxu1 }
 0x3ba   :  { %v1948_v60 = vmul.f32 -1.442695, %v302_v58 }
 0x3bb   :  { %v299_v61 = vpop.f32.mrf.mxu1 }
 0x3bc   :  { %2363 = vpow2.f32 %v1948_v60 }
 0x3bd   :  { %v2140_v62 = vpop.f32.mrf.mxu1  ;;  %2365 = vtanh.f32 %v302_v58 }
 0x3c9   :  { %v2364_v63 = vpop.eup %2363 }
 0x3ca   :  { %v307_v0 = vadd.f32 1.0, %v2364_v63  ;;  %v2366_v7 = vpop.eup %2365 }
 0x3cc   :  { %2367 = vrcp.f32 %v307_v0 }
 0x3d9   :  { %v2368_v8 = vpop.eup %2367 }
 0x3da   :  { %v310_v10 = vsel %vm2664_vm3, %v2366_v7, %v2368_v8 }
 0x3db   :  { %313 = vrot.lane.b32.xlu1 %v310_v10, %s2584_s24  ;;  %311 = vrot.lane.b32.xlu0 %v310_v10, %s2589_s22 }
 0x3df   :  { %315 = vrot.lane.b32.xlu0 %v310_v10, %s2588_s21 }
 0x44d   :  { %v314_v11 = vpop.permute.xlu1 %313  ;;  %v312_v12 = vpop.permute.xlu0 %311 }
 0x44e   :  { %v318_v13 = vmul.f32 %v314_v11, %v310_v10  ;;  %v317_v14 = vmul.f32 %v312_v12, %v254_v51 }
 0x450   :  { %v319_v15 = vadd.f32 %v318_v13, %v317_v14 }
 0x451   :  { %v316_v20 = vpop.permute.xlu0 %315 }
 0x452   :  { %2369 = vtanh.f32 %v319_v15 }
 0x45f   :  { %v2370_v16 = vpop.eup %2369 }
 0x460   :  { %v321_v22 = vmul.f32 %v2370_v16, %v316_v20  ;;  %v2337_v20 = vld [vmem:[%s3122_s1 + $0x18] sm:$0xff]  }
 0x462   :  { %322 = vst.msk [vmem:[#allocation2 + $0x10] sm:$0xff] %vm83_vm0, %v321_v22  ;;  %v323_v23 = vpack.c.bf16 %v321_v22, %v321_v22 }
 0x464   :  { %2146 = vmatmul.mubr.msk.bf16.vlgmr.msra.gmra.mxu0 %vm83_vm0, %v323_v23 }
 0x465   :  { %2158 = vmatpush3.bf16.msra.mxu0 %v2662_v17  ;;  %2161 = vmatprep.mubr.msk.bf16.mxu0 %vm2587_vm4, %v2586_v19 }
 0x466   :  { %2159 = vmatprep.subr.bf16.mxu0 %v2586_v19 }
 0x469   :  { %2160 = vmatpush3.bf16.msra.mxu0 %v2675_v21 }
 0x46a   :  { %2173 = vmatprep.subr.bf16.mxu0 %v2586_v19 }
 0x524   :  { %v361_v29 = vpop.f32.mrf.mxu0 }
 0x525   :  { %v367_v30 = vadd.f32 %v361_v29, %v142_v28 }
 0x526   :  { %v2147_v31 = vpop.f32.mrf.mxu0 }
 0x527   :  { %v1950_v32 = vmul.f32 -1.442695, %v367_v30 }
 0x528   :  { %v364_v34 = vpop.f32.mrf.mxu0 }
 0x529   :  { %2371 = vpow2.f32 %v1950_v32  ;;  %v656_v32 = vld [vmem:[#allocation2 + $0x8] sm:$0xff] }
 0x52a   :  { %v2148_v35 = vpop.f32.mrf.mxu0  ;;  %2373 = vtanh.f32 %v367_v30 }
 0x52b   :  { %v655_v35 = vld [vmem:[#allocation2] sm:$0xff] }
 0x536   :  { %v2372_v36 = vpop.eup %2371 }
 0x537   :  { %v372_v37 = vadd.f32 1.0, %v2372_v36  ;;  %v2374_v38 = vpop.eup %2373  ;;  %v2338_v36 = vld [vmem:[%s3122_s1 + $0x10] sm:$0xff]  }
 0x539   :  { %2375 = vrcp.f32 %v372_v37  ;;  %v663_v37 = vpack.c.bf16 %v656_v32, %v655_v35 }
 0x546   :  { %v2376_v39 = vpop.eup %2375 }
 0x547   :  { %v375_v40 = vsel %vm2664_vm3, %v2374_v38, %v2376_v39  ;;  %v657_v39 = vld [vmem:[#allocation2 + $0x10] sm:$0xff] }
 0x548   :  { %378 = vrot.lane.b32.xlu0 %v375_v40, %s2584_s24  ;;  %376 = vrot.lane.b32.xlu1 %v375_v40, %s2589_s22 }
 0x54c   :  { %380 = vrot.lane.b32.xlu1 %v375_v40, %s2588_s21 }
 0x5ba   :  { %v379_v33 = vpop.permute.xlu0 %378  ;;  %v377_v41 = vpop.permute.xlu1 %376 }
 0x5bb   :  { %v383_v42 = vmul.f32 %v379_v33, %v375_v40  ;;  %v382_v43 = vmul.f32 %v377_v41, %v319_v15 }
 0x5bd   :  { %v384_v44 = vadd.f32 %v383_v42, %v382_v43  ;;  %v155_v43 = vadd.f32 %v2745_v24, %v2656_v9 }
 0x5be   :  { %v381_v46 = vpop.permute.xlu1 %380 }
 0x5bf   :  { %2377 = vtanh.f32 %v384_v44 }
 0x5cc   :  { %v2378_v45 = vpop.eup %2377 }
 0x5cd   :  { %v386_v47 = vmul.f32 %v2378_v45, %v381_v46 }
 0x5cf   :  { %387 = vst.msk [vmem:[#allocation2 + $0x18] sm:$0xff] %vm83_vm0, %v386_v47  ;;  %v388_v48 = vpack.c.bf16 %v386_v47, %v386_v47 }
 0x5d1   :  { %2154 = vmatmul.mubr.msk.bf16.vlgmr.msra.gmra.mxu1 %vm83_vm0, %v388_v48 }
 0x5d2   :  { %2166 = vmatpush3.bf16.msra.mxu1 %v2662_v17  ;;  %2169 = vmatprep.mubr.msk.bf16.mxu1 %vm2587_vm4, %v2586_v19 }
 0x5d3   :  { %2167 = vmatprep.subr.bf16.mxu1 %v2586_v19 }
 0x5d6   :  { %2168 = vmatpush3.bf16.msra.mxu1 %v2675_v21  ;;  %v658_v38 = vld [vmem:[#allocation2 + $0x18] sm:$0xff] }
 0x5d7   :  { %2181 = vmatprep.subr.bf16.mxu1 %v2337_v20  ;;  %v664_v41 = vpack.c.bf16 %v658_v38, %v657_v39 }
 0x691   :  { %v426_v50 = vpop.f32.mrf.mxu1 }
 0x692   :  { %v432_v51 = vadd.f32 %v426_v50, %v147_v49 }
 0x693   :  { %v2155_v52 = vpop.f32.mrf.mxu1 }
 0x694   :  { %v1952_v53 = vmul.f32 -1.442695, %v432_v51 }
 0x695   :  { %v429_v54 = vpop.f32.mrf.mxu1 }
 0x696   :  { %2379 = vpow2.f32 %v1952_v53 }
 0x697   :  { %v2156_v55 = vpop.f32.mrf.mxu1  ;;  %2381 = vtanh.f32 %v432_v51  ;;  %v2808_v51 = vld [vmem:[%s3124_s3 + $0x1] ss:$0 sm:$0xff] }
 0x6a3   :  { %v2380_v56 = vpop.eup %2379 }
 0x6a4   :  { %v437_v57 = vadd.f32 1.0, %v2380_v56  ;;  %v2382_v58 = vpop.eup %2381 }
 0x6a6   :  { %2383 = vrcp.f32 %v437_v57 }
 0x6b3   :  { %v2384_v59 = vpop.eup %2383 }
 0x6b4   :  { %v440_v60 = vsel %vm2664_vm3, %v2382_v58, %v2384_v59 }
 0x6b5   :  { %443 = vrot.lane.b32.xlu1 %v440_v60, %s2584_s24  ;;  %441 = vrot.lane.b32.xlu0 %v440_v60, %s2589_s22 }
 0x6b9   :  { %445 = vrot.lane.b32.xlu0 %v440_v60, %s2588_s21 }
 0x727   :  { %v444_v61 = vpop.permute.xlu1 %443  ;;  %v442_v62 = vpop.permute.xlu0 %441 }
 0x728   :  { %v448_v63 = vmul.f32 %v444_v61, %v440_v60  ;;  %v447_v0 = vmul.f32 %v442_v62, %v384_v44 }
 0x72a   :  { %v449_v1 = vadd.f32 %v448_v63, %v447_v0  ;;  %v2822_v0 = vld [vmem:[%s3123_s2 + $0x18] sm:$0xff]  }
 0x72b   :  { %v446_v3 = vpop.permute.xlu0 %445 }
 0x72c   :  { %2385 = vtanh.f32 %v449_v1 }
 0x739   :  { %v2386_v2 = vpop.eup %2385 }
 0x73a   :  { %v451_v4 = vmul.f32 %v2386_v2, %v446_v3 }
 0x73c   :  { %452 = vst.msk [vmem:[#allocation2 + $0x20] sm:$0xff] %vm83_vm0, %v451_v4  ;;  %v453_v5 = vpack.c.bf16 %v451_v4, %v451_v4 }
 0x73e   :  { %2162 = vmatmul.mubr.msk.bf16.vlgmr.msra.gmra.mxu0 %vm83_vm0, %v453_v5 }
 0x73f   :  { %2174 = vmatpush3.bf16.msra.mxu0 %v2662_v17  ;;  %2177 = vmatprep.mubr.msk.bf16.mxu0 %vm2587_vm4, %v2586_v19 }
 0x740   :  { %2175 = vmatprep.subr.bf16.mxu0 %v2586_v19 }
 0x743   :  { %2176 = vmatpush3.bf16.msra.mxu0 %v2675_v21  ;;  %v659_v40 = vld [vmem:[#allocation2 + $0x20] sm:$0xff] }
 0x744   :  { %2193 = vmatprep.subr.bf16.mxu0 %v2586_v19 }
 0x7fe   :  { %v491_v7 = vpop.f32.mrf.mxu0 }
 0x7ff   :  { %v497_v8 = vadd.f32 %v491_v7, %v150_v6 }
 0x800   :  { %v2163_v10 = vpop.f32.mrf.mxu0 }
 0x801   :  { %v1954_v11 = vmul.f32 -1.442695, %v497_v8 }
 0x802   :  { %v494_v12 = vpop.f32.mrf.mxu0 }
 0x803   :  { %2387 = vpow2.f32 %v1954_v11 }
 0x804   :  { %v2164_v13 = vpop.f32.mrf.mxu0  ;;  %2389 = vtanh.f32 %v497_v8 }
 0x810   :  { %v2388_v17 = vpop.eup %2387 }
 0x811   :  { %v502_v14 = vadd.f32 1.0, %v2388_v17  ;;  %v2390_v15 = vpop.eup %2389 }
 0x813   :  { %2391 = vrcp.f32 %v502_v14 }
 0x820   :  { %v2392_v16 = vpop.eup %2391 }
 0x821   :  { %v505_v21 = vsel %vm2664_vm3, %v2390_v15, %v2392_v16 }
 0x822   :  { %508 = vrot.lane.b32.xlu0 %v505_v21, %s2584_s24  ;;  %506 = vrot.lane.b32.xlu1 %v505_v21, %s2589_s22 }
 0x826   :  { %510 = vrot.lane.b32.xlu1 %v505_v21, %s2588_s21 }
 0x894   :  { %v509_v22 = vpop.permute.xlu0 %508  ;;  %v507_v23 = vpop.permute.xlu1 %506 }
 0x895   :  { %v513_v25 = vmul.f32 %v509_v22, %v505_v21  ;;  %v512_v27 = vmul.f32 %v507_v23, %v449_v1  ;;  %v2831_v1 = vld [vmem:[%s3123_s2 + $0x10] sm:$0xff]  }
 0x897   :  { %v2789_v28 = vadd.f32 %v513_v25, %v512_v27 }
 0x898   :  { %v511_v30 = vpop.permute.xlu1 %510 }
 0x899   :  { %2393 = vtanh.f32 %v2789_v28 }
 0x8a6   :  { %v2394_v29 = vpop.eup %2393 }
 0x8a7   :  { %v516_v31 = vmul.f32 %v2394_v29, %v511_v30 }
 0x8a9   :  { %517 = vst.msk [vmem:[#allocation2 + $0x28] sm:$0xff] %vm83_vm0, %v516_v31  ;;  %v518_v34 = vpack.c.bf16 %v516_v31, %v516_v31 }
 0x8ab   :  { %2170 = vmatmul.mubr.msk.bf16.vlgmr.msra.gmra.mxu1 %vm83_vm0, %v518_v34 }
 0x8ac   :  { %2182 = vmatpush3.bf16.msra.mxu1 %v2337_v20  ;;  %2185 = vmatprep.mubr.msk.bf16.mxu1 %vm83_vm0, %v663_v37 }
 0x8ad   :  { %2183 = vmatprep.subr.bf16.mxu1 %v2338_v36 }
 0x8b0   :  { %2184 = vmatpush3.bf16.msra.mxu1 %v2338_v36  ;;  %v660_v33 = vld [vmem:[#allocation2 + $0x28] sm:$0xff] }
 0x8b1   :  { %v665_v42 = vpack.c.bf16 %v660_v33, %v659_v40  ;;  %2209 = vmatprep.subr.bf16.mxu1 %v2586_v19 }
 0x8b3   :  { %2186 = vmatmul.mubr.msk.bf16.vlgmr.msra.gmra.mxu1 %vm83_vm0, %v664_v41 }
 0x8b4   :  { %2189 = vmatprep.mubr.msk.bf16.mxu1 %vm83_vm0, %v665_v42  ;;  %2210 = vmatpush3.bf16.msra.mxu1 %v2822_v0 }
 0x8b5   :  { %2211 = vmatprep.subr.bf16.mxu1 %v2586_v19 }
 0x8b8   :  { %2212 = vmatpush3.bf16.msra.mxu1 %v2831_v1 }
 0x8b9   :  { %2225 = vmatprep.subr.bf16.mxu1 %v2586_v19 }
 0x96b   :  { %v556_v44 = vpop.f32.mrf.mxu1 }
 0x96c   :  { %v562_v45 = vadd.f32 %v556_v44, %v155_v43 }
 0x96d   :  { %v2171_v46 = vpop.f32.mrf.mxu1 }
 0x96e   :  { %v1956_v47 = vmul.f32 -1.442695, %v562_v45 }
 0x96f   :  { %v559_v48 = vpop.f32.mrf.mxu1 }
 0x970   :  { %2395 = vpow2.f32 %v1956_v47 }
 0x971   :  { %v2172_v49 = vpop.f32.mrf.mxu1 }
 0x973   :  { %v2803_v50 = vpop.f32.mrf.mxu1 }
 0x975   :  { %v736_v52 = vpop.f32.mrf.mxu1 }
 0x976   :  { %v737_v53 = vadd.f32 %v2808_v51, %v736_v52 }
 0x977   :  { %v2858_v25 = vpop.f32.mrf.mxu1 }
 0x978   :  { %v1975_v54 = vmul.f32 -1.442695, %v737_v53 }
 0x979   :  { %v739_v31 = vpop.f32.mrf.mxu1 }
 0x97a   :  { %2397 = vpow2.f32 %v1975_v54  ;;  %v740_v34 = vadd.f32 %v2808_v51, %v739_v31 }
 0x97b   :  { %2399 = vtanh.f32 %v562_v45 }
 0x97d   :  { %v2396_v24 = vpop.eup %2395 }
 0x97e   :  { %v567_v55 = vadd.f32 1.0, %v2396_v24 }
 0x980   :  { %2401 = vrcp.f32 %v567_v55 }
 0x981   :  { %2403 = vtanh.f32 %v737_v53 }
 0x987   :  { %v2398_v56 = vpop.eup %2397 }
 0x988   :  { %v771_v57 = vadd.f32 1.0, %v2398_v56  ;;  %v2400_v58 = vpop.eup %2399 }
 0x98a   :  { %2405 = vrcp.f32 %v771_v57 }
 0x98d   :  { %v2402_v59 = vpop.eup %2401 }
 0x98e   :  { %v570_v60 = vsel %vm2664_vm3, %v2400_v58, %v2402_v59  ;;  %v2404_v61 = vpop.eup %2403  ;;  %v745_v59 = vadd.f32 %v2803_v50, %v2808_v51 }
 0x98f   :  { %573 = vrot.lane.b32.xlu1 %v570_v60, %s2584_s24  ;;  %571 = vrot.lane.b32.xlu0 %v570_v60, %s2589_s22 }
 0x997   :  { %v2406_v62 = vpop.eup %2405 }
 0x998   :  { %v774_v63 = vsel %vm2664_vm3, %v2404_v61, %v2406_v62 }
 0x999   :  { %777 = vrot.lane.b32.xlu1 %v774_v63, %s2584_s24  ;;  %775 = vrot.lane.b32.xlu0 %v774_v63, %s2589_s22 }
 0x99d   :  { %779 = vrot.lane.b32.xlu1 %v774_v63, %s2588_s21  ;;  %575 = vrot.lane.b32.xlu0 %v570_v60, %s2588_s21 }
 0xa01   :  { %v574_v2 = vpop.permute.xlu1 %573  ;;  %v572_v3 = vpop.permute.xlu0 %571 }
 0xa02   :  { %v578_v4 = vmul.f32 %v574_v2, %v570_v60  ;;  %v577_v5 = vmul.f32 %v572_v3, %v2789_v28  ;;  %v158_v28 = vadd.f32 %v2747_v26, %v2656_v9 }
 0xa04   :  { %v2836_v6 = vadd.f32 %v578_v4, %v577_v5 }
 0xa06   :  { %2407 = vtanh.f32 %v2836_v6 }
 0xa0b   :  { %v778_v7 = vpop.permute.xlu1 %777  ;;  %v776_v8 = vpop.permute.xlu0 %775 }
 0xa0c   :  { %v782_v10 = vmul.f32 %v778_v7, %v774_v63  ;;  %v781_v11 = vmul.f32 0.0, %v776_v8 }
 0xa0e   :  { %v2839_v12 = vadd.f32 %v782_v10, %v781_v11 }
 0xa0f   :  { %v576_v17 = vpop.permute.xlu0 %575  ;;  %v780_v21 = vpop.permute.xlu1 %779 }
 0xa10   :  { %2409 = vtanh.f32 %v2839_v12 }
 0xa13   :  { %v2408_v13 = vpop.eup %2407 }
 0xa14   :  { %v581_v14 = vmul.f32 %v2408_v13, %v576_v17 }
 0xa16   :  { %582 = vst.msk [vmem:[#allocation2 + $0x30] sm:$0xff] %vm83_vm0, %v581_v14  ;;  %v583_v15 = vpack.c.bf16 %v581_v14, %v581_v14 }
 0xa18   :  { %2178 = vmatmul.mubr.msk.bf16.vlgmr.msra.gmra.mxu0 %vm83_vm0, %v583_v15 }
 0xa19   :  { %2194 = vmatpush3.bf16.msra.mxu0 %v2822_v0  ;;  %2197 = vmatprep.mubr.msk.bf16.mxu0 %vm2587_vm4, %v2586_v19 }
 0xa1a   :  { %2195 = vmatprep.subr.bf16.mxu0 %v2586_v19 }
 0xa1d   :  { %v2410_v16 = vpop.eup %2409  ;;  %2196 = vmatpush3.bf16.msra.mxu0 %v2831_v1 }
 0xa1e   :  { %v785_v20 = vmul.f32 %v2410_v16, %v780_v21  ;;  %2201 = vmatprep.subr.bf16.mxu0 %v2586_v19 }
 0xa20   :  { %786 = vst.msk [vmem:[#allocation2] sm:$0xff] %vm83_vm0, %v785_v20  ;;  %v787_v22 = vpack.c.bf16 %v785_v20, %v785_v20 }
 0xa22   :  { %2198 = vmatmul.mubr.msk.bf16.vlgmr.msra.gmra.mxu0 %vm83_vm0, %v787_v22 }
 0xa23   :  { %2202 = vmatpush3.bf16.msra.mxu0 %v2822_v0  ;;  %2205 = vmatprep.mubr.msk.bf16.mxu0 %vm2587_vm4, %v2586_v19 }
 0xa24   :  { %2203 = vmatprep.subr.bf16.mxu0 %v2586_v19 }
 0xa27   :  { %2204 = vmatpush3.bf16.msra.mxu0 %v2831_v1 }
 0xa28   :  { %2217 = vmatprep.subr.bf16.mxu0 %v2586_v19 }
 0xad8   :  { %v621_v23 = vpop.f32.mrf.mxu0 }
 0xad9   :  { %v627_v30 = vadd.f32 %v621_v23, %v158_v28  ;;  %v661_v28 = vld [vmem:[#allocation2 + $0x30] sm:$0xff] }
 0xada   :  { %v2179_v27 = vpop.f32.mrf.mxu0 }
 0xadb   :  { %v1958_v35 = vmul.f32 -1.442695, %v627_v30 }
 0xadc   :  { %v624_v29 = vpop.f32.mrf.mxu0 }
 0xadd   :  { %2411 = vpow2.f32 %v1958_v35 }
 0xade   :  { %v2180_v32 = vpop.f32.mrf.mxu0 }
 0xae2   :  { %v837_v36 = vpop.f32.mrf.mxu0 }
 0xae3   :  { %v843_v37 = vadd.f32 %v837_v36, %v740_v34 }
 0xae4   :  { %v2199_v38 = vpop.f32.mrf.mxu0 }
 0xae5   :  { %v1979_v39 = vmul.f32 -1.442695, %v843_v37 }
 0xae6   :  { %v840_v40 = vpop.f32.mrf.mxu0 }
 0xae7   :  { %2413 = vpow2.f32 %v1979_v39  ;;  %v748_v39 = vadd.f32 %v2858_v25, %v2808_v51 }
 0xae8   :  { %v2200_v33 = vpop.f32.mrf.mxu0  ;;  %2415 = vtanh.f32 %v843_v37 }
 0xaea   :  { %v2412_v41 = vpop.eup %2411 }
 0xaeb   :  { %v632_v43 = vadd.f32 1.0, %v2412_v41 }
 0xaf4   :  { %v2414_v42 = vpop.eup %2413 }
 0xaf5   :  { %v848_v44 = vadd.f32 1.0, %v2414_v42  ;;  %v2416_v9 = vpop.eup %2415 }
 0xaf7   :  { %2417 = vrcp.f32 %v848_v44 }
 0xaf8   :  { %2419 = vrcp.f32 %v632_v43 }
 0xaf9   :  { %2421 = vtanh.f32 %v627_v30 }
 0xb04   :  { %v2418_v26 = vpop.eup %2417 }
 0xb05   :  { %v851_v45 = vsel %vm2664_vm3, %v2416_v9, %v2418_v26  ;;  %v2420_v46 = vpop.eup %2419 }
 0xb06   :  { %854 = vrot.lane.b32.xlu1 %v851_v45, %s2584_s24  ;;  %852 = vrot.lane.b32.xlu0 %v851_v45, %s2589_s22  ;;  %v2422_v47 = vpop.eup %2421 }
 0xb07   :  { %v635_v48 = vsel %vm2664_vm3, %v2422_v47, %v2420_v46 }
 0xb0a   :  { %636 = vrot.lane.b32.xlu1 %v635_v48, %s2589_s22  ;;  %856 = vrot.lane.b32.xlu0 %v851_v45, %s2588_s21 }
 0xb0e   :  { %638 = vrot.lane.b32.xlu0 %v635_v48, %s2584_s24 }
 0xb78   :  { %v855_v49 = vpop.permute.xlu1 %854  ;;  %v853_v52 = vpop.permute.xlu0 %852 }
 0xb79   :  { %v859_v53 = vmul.f32 %v855_v49, %v851_v45  ;;  %v858_v54 = vmul.f32 %v853_v52, %v2839_v12 }
 0xb7b   :  { %v860_v24 = vadd.f32 %v859_v53, %v858_v54 }
 0xb7c   :  { %v857_v56 = vpop.permute.xlu0 %856  ;;  %v637_v11 = vpop.permute.xlu1 %636 }
 0xb7d   :  { %2423 = vtanh.f32 %v860_v24  ;;  %v642_v13 = vmul.f32 %v637_v11, %v2836_v6 }
 0xb80   :  { %v639_v50 = vpop.permute.xlu0 %638 }
 0xb81   :  { %v643_v12 = vmul.f32 %v639_v50, %v635_v48 }
 0xb83   :  { %v644_v17 = vadd.f32 %v643_v12, %v642_v13 }
 0xb8a   :  { %v2424_v55 = vpop.eup %2423 }
 0xb8b   :  { %v862_v57 = vmul.f32 %v2424_v55, %v857_v56 }
 0xb8d   :  { %863 = vst.msk [vmem:[#allocation2 + $0x8] sm:$0xff] %vm83_vm0, %v862_v57  ;;  %v864_v58 = vpack.c.bf16 %v862_v57, %v862_v57 }
 0xb8f   :  { %2206 = vmatmul.mubr.msk.bf16.vlgmr.msra.gmra.mxu0 %vm83_vm0, %v864_v58 }
 0xb90   :  { %2218 = vmatpush3.bf16.msra.mxu0 %v2822_v0  ;;  %2221 = vmatprep.mubr.msk.bf16.mxu0 %vm2587_vm4, %v2586_v19 }
 0xb91   :  { %2219 = vmatprep.subr.bf16.mxu0 %v2586_v19 }
 0xb94   :  { %2220 = vmatpush3.bf16.msra.mxu0 %v2831_v1 }
 0xb95   :  { %2233 = vmatprep.subr.bf16.mxu0 %v2586_v19 }
 0xc4f   :  { %v902_v60 = vpop.f32.mrf.mxu0 }
 0xc50   :  { %v908_v61 = vadd.f32 %v902_v60, %v745_v59 }
 0xc51   :  { %v2207_v62 = vpop.f32.mrf.mxu0 }
 0xc52   :  { %v1981_v63 = vmul.f32 -1.442695, %v908_v61 }
 0xc53   :  { %v905_v2 = vpop.f32.mrf.mxu0 }
 0xc54   :  { %2425 = vpow2.f32 %v1981_v63 }
 0xc55   :  { %v2208_v3 = vpop.f32.mrf.mxu0  ;;  %2427 = vtanh.f32 %v908_v61 }
 0xc61   :  { %v2426_v4 = vpop.eup %2425 }
 0xc62   :  { %v913_v5 = vadd.f32 1.0, %v2426_v4  ;;  %v2428_v7 = vpop.eup %2427 }
 0xc64   :  { %2429 = vrcp.f32 %v913_v5 }
 0xc65   :  { %2431 = vtanh.f32 %v644_v17 }
 0xc71   :  { %v2430_v8 = vpop.eup %2429 }
 0xc72   :  { %v916_v10 = vsel %vm2664_vm3, %v2428_v7, %v2430_v8  ;;  %v2432_v22 = vpop.eup %2431 }
 0xc73   :  { %919 = vrot.lane.b32.xlu0 %v916_v10, %s2584_s24  ;;  %917 = vrot.lane.b32.xlu1 %v916_v10, %s2589_s22 }
 0xc77   :  { %921 = vrot.lane.b32.xlu0 %v916_v10, %s2588_s21  ;;  %640 = vrot.lane.b32.xlu1 %v635_v48, %s2588_s21 }
 0xce5   :  { %v920_v14 = vpop.permute.xlu0 %919  ;;  %v918_v15 = vpop.permute.xlu1 %917 }
 0xce6   :  { %v924_v16 = vmul.f32 %v920_v14, %v916_v10  ;;  %v923_v21 = vmul.f32 %v918_v15, %v860_v24 }
 0xce8   :  { %v925_v20 = vadd.f32 %v924_v16, %v923_v21 }
 0xce9   :  { %v641_v23 = vpop.permute.xlu1 %640  ;;  %v922_v6 = vpop.permute.xlu0 %921 }
 0xcea   :  { %2433 = vtanh.f32 %v925_v20  ;;  %v646_v27 = vmul.f32 %v2432_v22, %v641_v23 }
 0xcec   :  { %647 = vst.msk [vmem:[#allocation2 + $0x38] sm:$0xff] %vm83_vm0, %v646_v27 }
 0xcf3   :  { %v662_v29 = vld [vmem:[#allocation2 + $0x38] sm:$0xff] }
 0xcf4   :  { %v666_v30 = vpack.c.bf16 %v662_v29, %v661_v28 }
 0xcf6   :  { %2190 = vmatmul.mubr.msk.bf16.gmra.mxu1 %vm83_vm0, %v666_v30 }
 0xcf7   :  { %v2434_v31 = vpop.eup %2433  ;;  %2213 = vmatprep.mubr.msk.bf16.mxu1 %vm2587_vm4, %v2586_v19 }
 0xcf8   :  { %v927_v32 = vmul.f32 %v2434_v31, %v922_v6  ;;  %v2341_v6 = vld [vmem:[%s3122_s1 + $0x28] sm:$0xff]  }
 0xcfa   :  { %928 = vst.msk [vmem:[#allocation2 + $0x10] sm:$0xff] %vm83_vm0, %v927_v32  ;;  %v929_v34 = vpack.c.bf16 %v927_v32, %v927_v32 }
 0xcfe   :  { %2214 = vmatmul.mubr.msk.bf16.vlgmr.msra.gmra.mxu1 %vm83_vm0, %v929_v34 }
 0xcff   :  { %2226 = vmatpush3.bf16.msra.mxu1 %v2822_v0  ;;  %2229 = vmatprep.mubr.msk.bf16.mxu1 %vm2587_vm4, %v2586_v19 }
 0xd00   :  { %2227 = vmatprep.subr.bf16.mxu1 %v2586_v19 }
 0xd03   :  { %2228 = vmatpush3.bf16.msra.mxu1 %v2831_v1 }
 0xd04   :  { %2241 = vmatprep.subr.bf16.mxu1 %v2586_v19 }
 0xdb6   :  { %v2902_v35 = vpop.f32.mrf.mxu1 }
 0xdb8   :  { %v752_v36 = vpop.f32.mrf.mxu1 }
 0xdb9   :  { %v753_v57 = vadd.f32 %v2808_v51, %v752_v36 }
 0xdba   :  { %v2904_v37 = vpop.f32.mrf.mxu1 }
 0xdbc   :  { %v2906_v38 = vpop.f32.mrf.mxu1 }
 0xdbd   :  { %v756_v16 = vadd.f32 %v2808_v51, %v2906_v38 }
 0xdbe   :  { %v967_v40 = vpop.f32.mrf.mxu1 }
 0xdbf   :  { %v973_v33 = vadd.f32 %v967_v40, %v748_v39 }
 0xdc0   :  { %v2215_v41 = vpop.f32.mrf.mxu1 }
 0xdc1   :  { %v1983_v42 = vmul.f32 -1.442695, %v973_v33 }
 0xdc2   :  { %v970_v43 = vpop.f32.mrf.mxu1 }
 0xdc3   :  { %2435 = vpow2.f32 %v1983_v42  ;;  %v1262_v42 = vld [vmem:[#allocation2 + $0x8] sm:$0xff] }
 0xdc4   :  { %v2216_v44 = vpop.f32.mrf.mxu1  ;;  %2437 = vtanh.f32 %v973_v33 }
 0xdc5   :  { %v1261_v44 = vld [vmem:[#allocation2] sm:$0xff] }
 0xdd0   :  { %v2436_v9 = vpop.eup %2435 }
 0xdd1   :  { %v978_v26 = vadd.f32 1.0, %v2436_v9  ;;  %v2438_v45 = vpop.eup %2437  ;;  %v2342_v9 = vld [vmem:[%s3122_s1 + $0x20] sm:$0xff]  }
 0xdd3   :  { %2439 = vrcp.f32 %v978_v26  ;;  %v1269_v26 = vpack.c.bf16 %v1262_v42, %v1261_v44 }
 0xde0   :  { %v2440_v46 = vpop.eup %2439 }
 0xde1   :  { %v981_v47 = vsel %vm2664_vm3, %v2438_v45, %v2440_v46  ;;  %v1263_v46 = vld [vmem:[#allocation2 + $0x10] sm:$0xff] }
 0xde2   :  { %984 = vrot.lane.b32.xlu0 %v981_v47, %s2584_s24  ;;  %982 = vrot.lane.b32.xlu1 %v981_v47, %s2589_s22 }
 0xde6   :  { %986 = vrot.lane.b32.xlu1 %v981_v47, %s2588_s21 }
 0xe54   :  { %v985_v25 = vpop.permute.xlu0 %984  ;;  %v983_v48 = vpop.permute.xlu1 %982 }
 0xe55   :  { %v989_v49 = vmul.f32 %v985_v25, %v981_v47  ;;  %v988_v52 = vmul.f32 %v983_v48, %v925_v20 }
 0xe57   :  { %v990_v53 = vadd.f32 %v989_v49, %v988_v52  ;;  %v761_v52 = vadd.f32 %v2902_v35, %v2808_v51 }
 0xe58   :  { %v987_v24 = vpop.permute.xlu1 %986 }
 0xe59   :  { %2441 = vtanh.f32 %v990_v53 }
 0xe66   :  { %v2442_v54 = vpop.eup %2441 }
 0xe67   :  { %v992_v55 = vmul.f32 %v2442_v54, %v987_v24 }
 0xe69   :  { %993 = vst.msk [vmem:[#allocation2 + $0x18] sm:$0xff] %vm83_vm0, %v992_v55  ;;  %v994_v56 = vpack.c.bf16 %v992_v55, %v992_v55 }
 0xe6b   :  { %2222 = vmatmul.mubr.msk.bf16.vlgmr.msra.gmra.mxu0 %vm83_vm0, %v994_v56 }
 0xe6c   :  { %2234 = vmatpush3.bf16.msra.mxu0 %v2822_v0  ;;  %2237 = vmatprep.mubr.msk.bf16.mxu0 %vm2587_vm4, %v2586_v19 }
 0xe6d   :  { %2235 = vmatprep.subr.bf16.mxu0 %v2586_v19 }
 0xe70   :  { %2236 = vmatpush3.bf16.msra.mxu0 %v2831_v1  ;;  %v1264_v45 = vld [vmem:[#allocation2 + $0x18] sm:$0xff] }
 0xe71   :  { %2249 = vmatprep.subr.bf16.mxu0 %v2341_v6  ;;  %v1270_v48 = vpack.c.bf16 %v1264_v45, %v1263_v46 }
 0xf2b   :  { %v1032_v58 = vpop.f32.mrf.mxu0 }
 0xf2c   :  { %v1038_v59 = vadd.f32 %v1032_v58, %v753_v57 }
 0xf2d   :  { %v2223_v60 = vpop.f32.mrf.mxu0 }
 0xf2e   :  { %v1985_v61 = vmul.f32 -1.442695, %v1038_v59 }
 0xf2f   :  { %v1035_v62 = vpop.f32.mrf.mxu0 }
 0xf30   :  { %2443 = vpow2.f32 %v1985_v61 }
 0xf31   :  { %v2224_v63 = vpop.f32.mrf.mxu0  ;;  %2445 = vtanh.f32 %v1038_v59  ;;  %v2965_v59 = vld [vmem:[%s3124_s3 + $0x2] ss:$0 sm:$0xff] }
 0xf3d   :  { %v2444_v2 = vpop.eup %2443 }
 0xf3e   :  { %v1043_v3 = vadd.f32 1.0, %v2444_v2  ;;  %v2446_v4 = vpop.eup %2445 }
 0xf40   :  { %2447 = vrcp.f32 %v1043_v3 }
 0xf4d   :  { %v2448_v5 = vpop.eup %2447 }
 0xf4e   :  { %v1046_v7 = vsel %vm2664_vm3, %v2446_v4, %v2448_v5 }
 0xf4f   :  { %1049 = vrot.lane.b32.xlu1 %v1046_v7, %s2584_s24  ;;  %1047 = vrot.lane.b32.xlu0 %v1046_v7, %s2589_s22 }
 0xf53   :  { %1051 = vrot.lane.b32.xlu0 %v1046_v7, %s2588_s21 }
 0xfc1   :  { %v1050_v8 = vpop.permute.xlu1 %1049  ;;  %v1048_v10 = vpop.permute.xlu0 %1047 }
 0xfc2   :  { %v1054_v50 = vmul.f32 %v1050_v8, %v1046_v7  ;;  %v1053_v11 = vmul.f32 %v1048_v10, %v990_v53 }
 0xfc4   :  { %v1055_v12 = vadd.f32 %v1054_v50, %v1053_v11  ;;  %v2979_v11 = vld [vmem:[%s3123_s2 + $0x28] sm:$0xff]  }
 0xfc5   :  { %v1052_v17 = vpop.permute.xlu0 %1051 }
 0xfc6   :  { %2449 = vtanh.f32 %v1055_v12 }
 0xfd3   :  { %v2450_v13 = vpop.eup %2449 }
 0xfd4   :  { %v1057_v14 = vmul.f32 %v2450_v13, %v1052_v17 }
 0xfd6   :  { %1058 = vst.msk [vmem:[#allocation2 + $0x20] sm:$0xff] %vm83_vm0, %v1057_v14  ;;  %v1059_v15 = vpack.c.bf16 %v1057_v14, %v1057_v14 }
 0xfd8   :  { %2230 = vmatmul.mubr.msk.bf16.vlgmr.msra.gmra.mxu1 %vm83_vm0, %v1059_v15 }
 0xfd9   :  { %2242 = vmatpush3.bf16.msra.mxu1 %v2822_v0  ;;  %2245 = vmatprep.mubr.msk.bf16.mxu1 %vm2587_vm4, %v2586_v19 }
 0xfda   :  { %2243 = vmatprep.subr.bf16.mxu1 %v2586_v19 }
 0xfdd   :  { %2244 = vmatpush3.bf16.msra.mxu1 %v2831_v1  ;;  %v1265_v47 = vld [vmem:[#allocation2 + $0x20] sm:$0xff] }
 0xfde   :  { %2261 = vmatprep.subr.bf16.mxu1 %v2586_v19 }
0x1098   :  { %v1097_v21 = vpop.f32.mrf.mxu1 }
0x1099   :  { %v1103_v20 = vadd.f32 %v1097_v21, %v756_v16 }
0x109a   :  { %v2231_v22 = vpop.f32.mrf.mxu1 }
0x109b   :  { %v1987_v23 = vmul.f32 -1.442695, %v1103_v20 }
0x109c   :  { %v1100_v27 = vpop.f32.mrf.mxu1 }
0x109d   :  { %2451 = vpow2.f32 %v1987_v23 }
0x109e   :  { %v2232_v28 = vpop.f32.mrf.mxu1  ;;  %2453 = vtanh.f32 %v1103_v20 }
0x10aa   :  { %v2452_v0 = vpop.eup %2451 }
0x10ab   :  { %v1108_v29 = vadd.f32 1.0, %v2452_v0  ;;  %v2454_v30 = vpop.eup %2453 }
0x10ad   :  { %2455 = vrcp.f32 %v1108_v29 }
0x10ba   :  { %v2456_v31 = vpop.eup %2455 }
0x10bb   :  { %v1111_v1 = vsel %vm2664_vm3, %v2454_v30, %v2456_v31 }
0x10bc   :  { %1114 = vrot.lane.b32.xlu0 %v1111_v1, %s2584_s24  ;;  %1112 = vrot.lane.b32.xlu1 %v1111_v1, %s2589_s22 }
0x10c0   :  { %1116 = vrot.lane.b32.xlu1 %v1111_v1, %s2588_s21 }
0x112e   :  { %v1115_v32 = vpop.permute.xlu0 %1114  ;;  %v1113_v34 = vpop.permute.xlu1 %1112 }
0x112f   :  { %v1119_v36 = vmul.f32 %v1115_v32, %v1111_v1  ;;  %v1118_v38 = vmul.f32 %v1113_v34, %v1055_v12  ;;  %v2988_v12 = vld [vmem:[%s3123_s2 + $0x20] sm:$0xff]  }
0x1131   :  { %v2946_v39 = vadd.f32 %v1119_v36, %v1118_v38 }
0x1132   :  { %v1117_v33 = vpop.permute.xlu1 %1116 }
0x1133   :  { %2457 = vtanh.f32 %v2946_v39 }
0x1140   :  { %v2458_v40 = vpop.eup %2457 }
0x1141   :  { %v1122_v41 = vmul.f32 %v2458_v40, %v1117_v33 }
0x1143   :  { %1123 = vst.msk [vmem:[#allocation2 + $0x28] sm:$0xff] %vm83_vm0, %v1122_v41  ;;  %v1124_v43 = vpack.c.bf16 %v1122_v41, %v1122_v41 }
0x1145   :  { %2238 = vmatmul.mubr.msk.bf16.vlgmr.msra.gmra.mxu0 %vm83_vm0, %v1124_v43 }
0x1146   :  { %2250 = vmatpush3.bf16.msra.mxu0 %v2341_v6  ;;  %2253 = vmatprep.mubr.msk.bf16.mxu0 %vm83_vm0, %v1269_v26 }
0x1147   :  { %2251 = vmatprep.subr.bf16.mxu0 %v2342_v9 }
0x114a   :  { %2252 = vmatpush3.bf16.msra.mxu0 %v2342_v9  ;;  %v1266_v25 = vld [vmem:[#allocation2 + $0x28] sm:$0xff] }
0x114b   :  { %v1271_v49 = vpack.c.bf16 %v1266_v25, %v1265_v47  ;;  %2277 = vmatprep.subr.bf16.mxu0 %v2586_v19 }
0x114d   :  { %2254 = vmatmul.mubr.msk.bf16.vlgmr.msra.gmra.mxu0 %vm83_vm0, %v1270_v48 }
0x114e   :  { %2257 = vmatprep.mubr.msk.bf16.mxu0 %vm83_vm0, %v1271_v49  ;;  %2278 = vmatpush3.bf16.msra.mxu0 %v2979_v11 }
0x114f   :  { %2279 = vmatprep.subr.bf16.mxu0 %v2586_v19 }
0x1152   :  { %2280 = vmatpush3.bf16.msra.mxu0 %v2988_v12 }
0x1153   :  { %2293 = vmatprep.subr.bf16.mxu0 %v2586_v19 }
0x1205   :  { %v1162_v53 = vpop.f32.mrf.mxu0 }
0x1206   :  { %v1168_v54 = vadd.f32 %v1162_v53, %v761_v52 }
0x1207   :  { %v2239_v24 = vpop.f32.mrf.mxu0 }
0x1208   :  { %v1989_v55 = vmul.f32 -1.442695, %v1168_v54 }
0x1209   :  { %v1165_v56 = vpop.f32.mrf.mxu0 }
0x120a   :  { %2459 = vpow2.f32 %v1989_v55 }
0x120b   :  { %v2240_v57 = vpop.f32.mrf.mxu0 }
0x120d   :  { %v2960_v58 = vpop.f32.mrf.mxu0 }
0x120f   :  { %v1342_v60 = vpop.f32.mrf.mxu0 }
0x1210   :  { %v1343_v61 = vadd.f32 %v2965_v59, %v1342_v60 }
0x1211   :  { %v3014_v36 = vpop.f32.mrf.mxu0 }
0x1212   :  { %v2008_v62 = vmul.f32 -1.442695, %v1343_v61 }
0x1213   :  { %v1345_v41 = vpop.f32.mrf.mxu0 }
0x1214   :  { %2461 = vpow2.f32 %v2008_v62  ;;  %v1346_v43 = vadd.f32 %v2965_v59, %v1345_v41 }
0x1215   :  { %2463 = vtanh.f32 %v1168_v54 }
0x1217   :  { %v2460_v35 = vpop.eup %2459 }
0x1218   :  { %v1173_v63 = vadd.f32 1.0, %v2460_v35 }
0x121a   :  { %2465 = vrcp.f32 %v1173_v63 }
0x121b   :  { %2467 = vtanh.f32 %v1343_v61 }
0x1221   :  { %v2462_v2 = vpop.eup %2461 }
0x1222   :  { %v1377_v3 = vadd.f32 1.0, %v2462_v2  ;;  %v2464_v4 = vpop.eup %2463 }
0x1224   :  { %2469 = vrcp.f32 %v1377_v3 }
0x1227   :  { %v2466_v5 = vpop.eup %2465 }
0x1228   :  { %v1176_v7 = vsel %vm2664_vm3, %v2464_v4, %v2466_v5  ;;  %v2468_v8 = vpop.eup %2467  ;;  %v1351_v5 = vadd.f32 %v2960_v58, %v2965_v59 }
0x1229   :  { %1179 = vrot.lane.b32.xlu1 %v1176_v7, %s2584_s24  ;;  %1177 = vrot.lane.b32.xlu0 %v1176_v7, %s2589_s22 }
0x1231   :  { %v2470_v10 = vpop.eup %2469 }
0x1232   :  { %v1380_v50 = vsel %vm2664_vm3, %v2468_v8, %v2470_v10 }
0x1233   :  { %1383 = vrot.lane.b32.xlu1 %v1380_v50, %s2584_s24  ;;  %1381 = vrot.lane.b32.xlu0 %v1380_v50, %s2589_s22 }
0x1237   :  { %1385 = vrot.lane.b32.xlu1 %v1380_v50, %s2588_s21  ;;  %1181 = vrot.lane.b32.xlu0 %v1176_v7, %s2588_s21 }
0x129b   :  { %v1180_v13 = vpop.permute.xlu1 %1179  ;;  %v1178_v17 = vpop.permute.xlu0 %1177 }
0x129c   :  { %v1184_v14 = vmul.f32 %v1180_v13, %v1176_v7  ;;  %v1183_v15 = vmul.f32 %v1178_v17, %v2946_v39  ;;  %v764_v39 = vadd.f32 %v2904_v37, %v2808_v51 }
0x129e   :  { %v2993_v16 = vadd.f32 %v1184_v14, %v1183_v15 }
0x12a0   :  { %2471 = vtanh.f32 %v2993_v16 }
0x12a5   :  { %v1384_v21 = vpop.permute.xlu1 %1383  ;;  %v1382_v20 = vpop.permute.xlu0 %1381 }
0x12a6   :  { %v1388_v22 = vmul.f32 %v1384_v21, %v1380_v50  ;;  %v1387_v23 = vmul.f32 0.0, %v1382_v20 }
0x12a8   :  { %v2996_v27 = vadd.f32 %v1388_v22, %v1387_v23 }
0x12a9   :  { %v1182_v0 = vpop.permute.xlu0 %1181  ;;  %v1386_v1 = vpop.permute.xlu1 %1385 }
0x12aa   :  { %2473 = vtanh.f32 %v2996_v27 }
0x12ad   :  { %v2472_v28 = vpop.eup %2471 }
0x12ae   :  { %v1187_v29 = vmul.f32 %v2472_v28, %v1182_v0 }
0x12b0   :  { %1188 = vst.msk [vmem:[#allocation2 + $0x30] sm:$0xff] %vm83_vm0, %v1187_v29  ;;  %v1189_v30 = vpack.c.bf16 %v1187_v29, %v1187_v29 }
0x12b2   :  { %2246 = vmatmul.mubr.msk.bf16.vlgmr.msra.gmra.mxu1 %vm83_vm0, %v1189_v30 }
0x12b3   :  { %2262 = vmatpush3.bf16.msra.mxu1 %v2979_v11  ;;  %2265 = vmatprep.mubr.msk.bf16.mxu1 %vm2587_vm4, %v2586_v19 }
0x12b4   :  { %2263 = vmatprep.subr.bf16.mxu1 %v2586_v19 }
0x12b7   :  { %v2474_v31 = vpop.eup %2473  ;;  %2264 = vmatpush3.bf16.msra.mxu1 %v2988_v12 }
0x12b8   :  { %v1391_v6 = vmul.f32 %v2474_v31, %v1386_v1  ;;  %2269 = vmatprep.subr.bf16.mxu1 %v2586_v19 }
0x12ba   :  { %v1392_v32 = vpack.c.bf16 %v1391_v6, %v1391_v6 }
0x12bc   :  { %2266 = vmatmul.mubr.msk.bf16.vlgmr.msra.gmra.mxu1 %vm83_vm0, %v1392_v32 }
0x12bd   :  { %2270 = vmatpush3.bf16.msra.mxu1 %v2979_v11  ;;  %2273 = vmatprep.mubr.msk.bf16.mxu1 %vm2587_vm4, %v2586_v19 }
0x12be   :  { %2271 = vmatprep.subr.bf16.mxu1 %v2586_v19 }
0x12c1   :  { %2272 = vmatpush3.bf16.msra.mxu1 %v2988_v12 }
0x12c2   :  { %2285 = vmatprep.subr.bf16.mxu1 %v2586_v19 }
0x1372   :  { %v1227_v34 = vpop.f32.mrf.mxu1 }
0x1373   :  { %v1233_v33 = vadd.f32 %v1227_v34, %v764_v39  ;;  %v1267_v39 = vld [vmem:[#allocation2 + $0x30] sm:$0xff] }
0x1374   :  { %v2247_v38 = vpop.f32.mrf.mxu1 }
0x1375   :  { %v1991_v44 = vmul.f32 -1.442695, %v1233_v33 }
0x1376   :  { %v1230_v40 = vpop.f32.mrf.mxu1 }
0x1377   :  { %2475 = vpow2.f32 %v1991_v44 }
0x1378   :  { %v2248_v42 = vpop.f32.mrf.mxu1 }
0x137c   :  { %v1442_v9 = vpop.f32.mrf.mxu1 }
0x137d   :  { %v1448_v26 = vadd.f32 %v1442_v9, %v1346_v43 }
0x137e   :  { %v2267_v45 = vpop.f32.mrf.mxu1 }
0x137f   :  { %v2012_v46 = vmul.f32 -1.442695, %v1448_v26 }
0x1380   :  { %v1445_v47 = vpop.f32.mrf.mxu1 }
0x1381   :  { %2477 = vpow2.f32 %v2012_v46  ;;  %v1354_v46 = vadd.f32 %v3014_v36, %v2965_v59 }
0x1382   :  { %v2268_v25 = vpop.f32.mrf.mxu1  ;;  %2479 = vtanh.f32 %v1448_v26 }
0x1384   :  { %v2476_v48 = vpop.eup %2475 }
0x1385   :  { %v1238_v52 = vadd.f32 1.0, %v2476_v48 }
0x138e   :  { %v2478_v49 = vpop.eup %2477 }
0x138f   :  { %v1453_v53 = vadd.f32 1.0, %v2478_v49  ;;  %v2480_v51 = vpop.eup %2479 }
0x1391   :  { %2481 = vrcp.f32 %v1453_v53 }
0x1392   :  { %2483 = vrcp.f32 %v1238_v52 }
0x1393   :  { %2485 = vtanh.f32 %v1233_v33 }
0x139e   :  { %v2482_v37 = vpop.eup %2481 }
0x139f   :  { %v1456_v54 = vsel %vm2664_vm3, %v2480_v51, %v2482_v37  ;;  %v2484_v24 = vpop.eup %2483 }
0x13a0   :  { %1459 = vrot.lane.b32.xlu1 %v1456_v54, %s2584_s24  ;;  %1457 = vrot.lane.b32.xlu0 %v1456_v54, %s2589_s22  ;;  %v2486_v55 = vpop.eup %2485 }
0x13a1   :  { %v1241_v56 = vsel %vm2664_vm3, %v2486_v55, %v2484_v24 }
0x13a4   :  { %1242 = vrot.lane.b32.xlu1 %v1241_v56, %s2589_s22  ;;  %1461 = vrot.lane.b32.xlu0 %v1456_v54, %s2588_s21 }
0x13a8   :  { %1244 = vrot.lane.b32.xlu0 %v1241_v56, %s2584_s24 }
0x1412   :  { %v1460_v57 = vpop.permute.xlu1 %1459  ;;  %v1458_v60 = vpop.permute.xlu0 %1457 }
0x1413   :  { %v1464_v61 = vmul.f32 %v1460_v57, %v1456_v54  ;;  %v1463_v62 = vmul.f32 %v1458_v60, %v2996_v27 }
0x1415   :  { %v1465_v35 = vadd.f32 %v1464_v61, %v1463_v62 }
0x1416   :  { %v1462_v2 = vpop.permute.xlu0 %1461  ;;  %v1243_v23 = vpop.permute.xlu1 %1242 }
0x1417   :  { %2487 = vtanh.f32 %v1465_v35  ;;  %v1248_v28 = vmul.f32 %v1243_v23, %v2993_v16 }
0x141a   :  { %v1245_v58 = vpop.permute.xlu0 %1244 }
0x141b   :  { %v1249_v27 = vmul.f32 %v1245_v58, %v1241_v56 }
0x141d   :  { %v1250_v0 = vadd.f32 %v1249_v27, %v1248_v28 }
0x1424   :  { %v2488_v63 = vpop.eup %2487 }
0x1425   :  { %v1467_v3 = vmul.f32 %v2488_v63, %v1462_v2 }
0x1427   :  { %v1468_v4 = vpack.c.bf16 %v1467_v3, %v1467_v3 }
0x1429   :  { %2274 = vmatmul.mubr.msk.bf16.vlgmr.msra.gmra.mxu1 %vm83_vm0, %v1468_v4 }
0x142a   :  { %2286 = vmatpush3.bf16.msra.mxu1 %v2979_v11  ;;  %2289 = vmatprep.mubr.msk.bf16.mxu1 %vm2587_vm4, %v2586_v19 }
0x142b   :  { %2287 = vmatprep.subr.bf16.mxu1 %v2586_v19 }
0x142e   :  { %2288 = vmatpush3.bf16.msra.mxu1 %v2988_v12 }
0x142f   :  { %2301 = vmatprep.subr.bf16.mxu1 %v2586_v19 }
0x14e9   :  { %v1506_v7 = vpop.f32.mrf.mxu1 }
0x14ea   :  { %v1512_v8 = vadd.f32 %v1506_v7, %v1351_v5 }
0x14eb   :  { %v2275_v10 = vpop.f32.mrf.mxu1 }
0x14ec   :  { %v2014_v50 = vmul.f32 -1.442695, %v1512_v8 }
0x14ed   :  { %v1509_v13 = vpop.f32.mrf.mxu1 }
0x14ee   :  { %2489 = vpow2.f32 %v2014_v50 }
0x14ef   :  { %v2276_v17 = vpop.f32.mrf.mxu1  ;;  %2491 = vtanh.f32 %v1512_v8 }
0x14fb   :  { %v2490_v14 = vpop.eup %2489 }
0x14fc   :  { %v1517_v15 = vadd.f32 1.0, %v2490_v14  ;;  %v2492_v21 = vpop.eup %2491 }
0x14fe   :  { %2493 = vrcp.f32 %v1517_v15 }
0x14ff   :  { %2495 = vtanh.f32 %v1250_v0 }
0x150b   :  { %v2494_v20 = vpop.eup %2493 }
0x150c   :  { %v1520_v22 = vsel %vm2664_vm3, %v2492_v21, %v2494_v20  ;;  %v2496_v32 = vpop.eup %2495 }
0x150d   :  { %1523 = vrot.lane.b32.xlu0 %v1520_v22, %s2584_s24  ;;  %1521 = vrot.lane.b32.xlu1 %v1520_v22, %s2589_s22 }
0x1511   :  { %1525 = vrot.lane.b32.xlu0 %v1520_v22, %s2588_s21  ;;  %1246 = vrot.lane.b32.xlu1 %v1241_v56, %s2588_s21 }
0x157f   :  { %v1524_v29 = vpop.permute.xlu0 %1523  ;;  %v1522_v30 = vpop.permute.xlu1 %1521 }
0x1580   :  { %v1528_v31 = vmul.f32 %v1524_v29, %v1520_v22  ;;  %v1527_v1 = vmul.f32 %v1522_v30, %v1465_v35 }
0x1582   :  { %v1529_v6 = vadd.f32 %v1528_v31, %v1527_v1 }
0x1583   :  { %v1247_v34 = vpop.permute.xlu1 %1246  ;;  %v1526_v16 = vpop.permute.xlu0 %1525 }
0x1584   :  { %2497 = vtanh.f32 %v1529_v6  ;;  %v1252_v38 = vmul.f32 %v2496_v32, %v1247_v34 }
0x1586   :  { %1253 = vst.msk [vmem:[#allocation2 + $0x38] sm:$0xff] %vm83_vm0, %v1252_v38 }
0x158d   :  { %v1268_v40 = vld [vmem:[#allocation2 + $0x38] sm:$0xff] }
0x158e   :  { %v1272_v33 = vpack.c.bf16 %v1268_v40, %v1267_v39 }
0x1590   :  { %2258 = vmatmul.mubr.msk.bf16.gmra.mxu0 %vm83_vm0, %v1272_v33 }
0x1591   :  { %v2498_v41 = vpop.eup %2497  ;;  %2281 = vmatprep.mubr.msk.bf16.mxu0 %vm2587_vm4, %v2586_v19 }
0x1592   :  { %v1531_v42 = vmul.f32 %v2498_v41, %v1526_v16 }
0x1594   :  { %v1532_v43 = vpack.c.bf16 %v1531_v42, %v1531_v42 }
0x1598   :  { %2282 = vmatmul.mubr.msk.bf16.vlgmr.msra.gmra.mxu0 %vm83_vm0, %v1532_v43 }
0x1599   :  { %2294 = vmatpush3.bf16.msra.mxu0 %v2979_v11  ;;  %2297 = vmatprep.mubr.msk.bf16.mxu0 %vm2587_vm4, %v2586_v19 }
0x159a   :  { %2295 = vmatprep.subr.bf16.mxu0 %v2586_v19 }
0x159d   :  { %2296 = vmatpush3.bf16.msra.mxu0 %v2988_v12 }
0x159e   :  { %2309 = vmatprep.subr.bf16.mxu0 %v2586_v19 }
0x1650   :  { %v3056_v44 = vpop.f32.mrf.mxu0 }
0x1652   :  { %v1358_v9 = vpop.f32.mrf.mxu0 }
0x1653   :  { %v1359_v3 = vadd.f32 %v2965_v59, %v1358_v9 }
0x1654   :  { %v3058_v26 = vpop.f32.mrf.mxu0 }
0x1656   :  { %v3060_v45 = vpop.f32.mrf.mxu0 }
0x1657   :  { %v1362_v31 = vadd.f32 %v2965_v59, %v3060_v45 }
0x1658   :  { %v1570_v47 = vpop.f32.mrf.mxu0 }
0x1659   :  { %v1576_v25 = vadd.f32 %v1570_v47, %v1354_v46 }
0x165a   :  { %v2283_v48 = vpop.f32.mrf.mxu0 }
0x165b   :  { %v2016_v49 = vmul.f32 -1.442695, %v1576_v25 }
0x165c   :  { %v1573_v52 = vpop.f32.mrf.mxu0 }
0x165d   :  { %2499 = vpow2.f32 %v2016_v49  ;;  %v1367_v49 = vadd.f32 %v3056_v44, %v2965_v59 }
0x165e   :  { %v2284_v53 = vpop.f32.mrf.mxu0  ;;  %2501 = vtanh.f32 %v1576_v25 }
0x166a   :  { %v2500_v51 = vpop.eup %2499 }
0x166b   :  { %v1581_v37 = vadd.f32 1.0, %v2500_v51  ;;  %v2502_v54 = vpop.eup %2501 }
0x166d   :  { %2503 = vrcp.f32 %v1581_v37 }
0x167a   :  { %v2504_v24 = vpop.eup %2503 }
0x167b   :  { %v1584_v55 = vsel %vm2664_vm3, %v2502_v54, %v2504_v24 }
0x167c   :  { %1587 = vrot.lane.b32.xlu0 %v1584_v55, %s2584_s24  ;;  %1585 = vrot.lane.b32.xlu1 %v1584_v55, %s2589_s22 }
0x1680   :  { %1589 = vrot.lane.b32.xlu1 %v1584_v55, %s2588_s21 }
0x16ee   :  { %v1588_v36 = vpop.permute.xlu0 %1587  ;;  %v1586_v56 = vpop.permute.xlu1 %1585 }
0x16ef   :  { %v1592_v57 = vmul.f32 %v1588_v36, %v1584_v55  ;;  %v1591_v60 = vmul.f32 %v1586_v56, %v1529_v6 }
0x16f1   :  { %v1593_v61 = vadd.f32 %v1592_v57, %v1591_v60 }
0x16f2   :  { %v1590_v35 = vpop.permute.xlu1 %1589 }
0x16f3   :  { %2505 = vtanh.f32 %v1593_v61 }
0x1700   :  { %v2506_v62 = vpop.eup %2505 }
0x1701   :  { %v1595_v63 = vmul.f32 %v2506_v62, %v1590_v35 }
0x1703   :  { %v1596_v2 = vpack.c.bf16 %v1595_v63, %v1595_v63 }
0x1705   :  { %2290 = vmatmul.mubr.msk.bf16.vlgmr.msra.gmra.mxu1 %vm83_vm0, %v1596_v2 }
0x1706   :  { %2302 = vmatpush3.bf16.msra.mxu1 %v2979_v11  ;;  %2305 = vmatprep.mubr.msk.bf16.mxu1 %vm2587_vm4, %v2586_v19 }
0x1707   :  { %2303 = vmatprep.subr.bf16.mxu1 %v2586_v19 }
0x170a   :  { %2304 = vmatpush3.bf16.msra.mxu1 %v2988_v12 }
0x170b   :  { %2317 = vmatprep.subr.bf16.mxu1 %v2586_v19 }
0x17c5   :  { %v1634_v4 = vpop.f32.mrf.mxu1 }
0x17c6   :  { %v1640_v5 = vadd.f32 %v1634_v4, %v1359_v3 }
0x17c7   :  { %v2291_v7 = vpop.f32.mrf.mxu1 }
0x17c8   :  { %v2018_v8 = vmul.f32 -1.442695, %v1640_v5  ;;  %v1370_v7 = vadd.f32 %v3058_v26, %v2965_v59  ;;  %v2345_v59 = vld [vmem:[#allocation3 + $0x8] sm:$0xff]   ;;  %v2346_v26 = vld [vmem:[#allocation3] sm:$0xff]  }
0x17c9   :  { %v1637_v10 = vpop.f32.mrf.mxu1 }
0x17ca   :  { %2507 = vpow2.f32 %v2018_v8 }
0x17cb   :  { %v2292_v50 = vpop.f32.mrf.mxu1  ;;  %2509 = vtanh.f32 %v1640_v5 }
0x17d7   :  { %v2508_v13 = vpop.eup %2507 }
0x17d8   :  { %v1645_v17 = vadd.f32 1.0, %v2508_v13  ;;  %v2510_v14 = vpop.eup %2509 }
0x17da   :  { %2511 = vrcp.f32 %v1645_v17 }
0x17e7   :  { %v2512_v15 = vpop.eup %2511 }
0x17e8   :  { %v1648_v21 = vsel %vm2664_vm3, %v2510_v14, %v2512_v15 }
0x17e9   :  { %1651 = vrot.lane.b32.xlu1 %v1648_v21, %s2584_s24  ;;  %1649 = vrot.lane.b32.xlu0 %v1648_v21, %s2589_s22 }
0x17ed   :  { %1653 = vrot.lane.b32.xlu0 %v1648_v21, %s2588_s21 }
0x185b   :  { %v1652_v20 = vpop.permute.xlu1 %1651  ;;  %v1650_v22 = vpop.permute.xlu0 %1649 }
0x185c   :  { %v1656_v58 = vmul.f32 %v1652_v20, %v1648_v21  ;;  %v1655_v23 = vmul.f32 %v1650_v22, %v1593_v61 }
0x185e   :  { %v1657_v27 = vadd.f32 %v1656_v58, %v1655_v23 }
0x185f   :  { %v1654_v0 = vpop.permute.xlu0 %1653 }
0x1860   :  { %2513 = vtanh.f32 %v1657_v27 }
0x186d   :  { %v2514_v28 = vpop.eup %2513 }
0x186e   :  { %v1659_v29 = vmul.f32 %v2514_v28, %v1654_v0 }
0x1870   :  { %v1660_v30 = vpack.c.bf16 %v1659_v29, %v1659_v29 }
0x1872   :  { %2298 = vmatmul.mubr.msk.bf16.vlgmr.msra.gmra.mxu0 %vm83_vm0, %v1660_v30 }
0x1873   :  { %2310 = vmatpush3.bf16.msra.mxu0 %v2979_v11  ;;  %2313 = vmatprep.mubr.msk.bf16.mxu0 %vm2587_vm4, %v2586_v19 }
0x1874   :  { %2311 = vmatprep.subr.bf16.mxu0 %v2586_v19 }
0x1877   :  { %2312 = vmatpush3.bf16.msra.mxu0 %v2988_v12 }
0x1932   :  { %v1698_v1 = vpop.f32.mrf.mxu0 }
0x1933   :  { %v1704_v6 = vadd.f32 %v1698_v1, %v1362_v31 }
0x1934   :  { %v2299_v32 = vpop.f32.mrf.mxu0 }
0x1935   :  { %v2020_v34 = vmul.f32 -1.442695, %v1704_v6 }
0x1936   :  { %v1701_v38 = vpop.f32.mrf.mxu0 }
0x1937   :  { %2515 = vpow2.f32 %v2020_v34 }
0x1938   :  { %v2300_v39 = vpop.f32.mrf.mxu0  ;;  %2517 = vtanh.f32 %v1704_v6 }
0x1944   :  { %v2516_v40 = vpop.eup %2515 }
0x1945   :  { %v1709_v33 = vadd.f32 1.0, %v2516_v40  ;;  %v2518_v11 = vpop.eup %2517 }
0x1947   :  { %2519 = vrcp.f32 %v1709_v33 }
0x1954   :  { %v2520_v41 = vpop.eup %2519 }
0x1955   :  { %v1712_v16 = vsel %vm2664_vm3, %v2518_v11, %v2520_v41 }
0x1956   :  { %1715 = vrot.lane.b32.xlu0 %v1712_v16, %s2584_s24  ;;  %1713 = vrot.lane.b32.xlu1 %v1712_v16, %s2589_s22 }
0x195a   :  { %1717 = vrot.lane.b32.xlu1 %v1712_v16, %s2588_s21 }
0x19c8   :  { %v1716_v12 = vpop.permute.xlu0 %1715  ;;  %v1714_v42 = vpop.permute.xlu1 %1713 }
0x19c9   :  { %v1720_v43 = vmul.f32 %v1716_v12, %v1712_v16  ;;  %v1719_v9 = vmul.f32 %v1714_v42, %v1657_v27 }
0x19cb   :  { %v1721_v45 = vadd.f32 %v1720_v43, %v1719_v9 }
0x19cc   :  { %v1718_v47 = vpop.permute.xlu1 %1717 }
0x19cd   :  { %2521 = vtanh.f32 %v1721_v45 }
0x19da   :  { %v2522_v46 = vpop.eup %2521 }
0x19db   :  { %v1723_v25 = vmul.f32 %v2522_v46, %v1718_v47 }
0x19dd   :  { %v1724_v48 = vpack.c.bf16 %v1723_v25, %v1723_v25 }
0x19df   :  { %2306 = vmatmul.mubr.msk.bf16.vlgmr.msra.gmra.mxu1 %vm83_vm0, %v1724_v48 }
0x19e0   :  { %2321 = vmatprep.mubr.msk.bf16.mxu1 %vm2587_vm4, %v2586_v19  ;;  %2318 = vmatpush3.bf16.msra.mxu1 %v2345_v59 }
0x19e1   :  { %2319 = vmatprep.subr.bf16.mxu1 %v2586_v19  ;;  %v2025_v19 = vld [vmem:[%s3126_s5] ss:$0 sm:$0xff] }
0x19e4   :  { %2320 = vmatpush3.bf16.msra.mxu1 %v2346_v26 }
0x1a9f   :  { %v1762_v52 = vpop.f32.mrf.mxu1 }
0x1aa0   :  { %v1768_v53 = vadd.f32 %v1762_v52, %v1367_v49 }
0x1aa1   :  { %v2307_v51 = vpop.f32.mrf.mxu1 }
0x1aa2   :  { %v2022_v37 = vmul.f32 -1.442695, %v1768_v53 }
0x1aa3   :  { %v1765_v54 = vpop.f32.mrf.mxu1 }
0x1aa4   :  { %2523 = vpow2.f32 %v2022_v37 }
0x1aa5   :  { %v2308_v24 = vpop.f32.mrf.mxu1  ;;  %2525 = vtanh.f32 %v1768_v53 }
0x1ab1   :  { %v2524_v55 = vpop.eup %2523 }
0x1ab2   :  { %v1773_v36 = vadd.f32 1.0, %v2524_v55  ;;  %v2526_v56 = vpop.eup %2525 }
0x1ab4   :  { %2527 = vrcp.f32 %v1773_v36 }
0x1ac1   :  { %v2528_v57 = vpop.eup %2527 }
0x1ac2   :  { %v1776_v60 = vsel %vm2664_vm3, %v2526_v56, %v2528_v57 }
0x1ac3   :  { %1779 = vrot.lane.b32.xlu1 %v1776_v60, %s2584_s24  ;;  %1777 = vrot.lane.b32.xlu0 %v1776_v60, %s2589_s22 }
0x1ac7   :  { %1781 = vrot.lane.b32.xlu0 %v1776_v60, %s2588_s21 }
0x1b35   :  { %v1780_v44 = vpop.permute.xlu1 %1779  ;;  %v1778_v61 = vpop.permute.xlu0 %1777 }
0x1b36   :  { %v1784_v62 = vmul.f32 %v1780_v44, %v1776_v60  ;;  %v1783_v35 = vmul.f32 %v1778_v61, %v1721_v45 }
0x1b38   :  { %v1785_v63 = vadd.f32 %v1784_v62, %v1783_v35 }
0x1b39   :  { %v1782_v3 = vpop.permute.xlu0 %1781 }
0x1b3a   :  { %2529 = vtanh.f32 %v1785_v63 }
0x1b47   :  { %v2530_v2 = vpop.eup %2529 }
0x1b48   :  { %v1787_v4 = vmul.f32 %v2530_v2, %v1782_v3 }
0x1b4a   :  { %v1788_v5 = vpack.c.bf16 %v1787_v4, %v1787_v4 }
0x1b4c   :  { %2314 = vmatmul.mubr.msk.bf16.vlgmr.msra.gmra.mxu0 %vm83_vm0, %v1788_v5 }
0x1c0c   :  { %v1826_v8 = vpop.f32.mrf.mxu0 }
0x1c0d   :  { %v1832_v10 = vadd.f32 %v1826_v8, %v1370_v7 }
0x1c0e   :  { %v2315_v50 = vpop.f32.mrf.mxu0 }
0x1c0f   :  { %v2024_v13 = vmul.f32 -1.442695, %v1832_v10 }
0x1c10   :  { %v1829_v17 = vpop.f32.mrf.mxu0 }
0x1c11   :  { %2531 = vpow2.f32 %v2024_v13 }
0x1c12   :  { %v2316_v14 = vpop.f32.mrf.mxu0  ;;  %2533 = vtanh.f32 %v1832_v10 }
0x1c1e   :  { %v2532_v15 = vpop.eup %2531 }
0x1c1f   :  { %v1837_v21 = vadd.f32 1.0, %v2532_v15  ;;  %v2534_v20 = vpop.eup %2533 }
0x1c21   :  { %2535 = vrcp.f32 %v1837_v21 }
0x1c2e   :  { %v2536_v22 = vpop.eup %2535 }
0x1c2f   :  { %v1840_v58 = vsel %vm2664_vm3, %v2534_v20, %v2536_v22 }
0x1c30   :  { %1843 = vrot.lane.b32.xlu0 %v1840_v58, %s2584_s24  ;;  %1841 = vrot.lane.b32.xlu1 %v1840_v58, %s2589_s22  ;;  %s2590_s22 = smov [#allocation6]  }
0x1c34   :  { %1845 = vrot.lane.b32.xlu1 %v1840_v58, %s2588_s21  ;;  %s1926_s21 = sshll.u32 %s2590_s22, 4  ;;  %s1927_s21 = int_to_ptr.vmem [resolvable:$true] %s1926_s21 }
0x1c35   :  { %s2559_s27 = scalar_lea.vmem %s1927_s21, 128  ;;  %p2564_p6 = scmp.lt.s32.totalorder %s1927_s21, %s1927_s21 }
0x1c36   :  { %p2560_p5 = scmp.ne.s32.totalorder %s1927_s21, %s2559_s27  ;;  %p2565_p7 = scmp.lt.s32.totalorder %s2559_s27, %s2559_s27 }
0x1c38   :  { %p2566_p8 = por %p2565_p7, %p2564_p6 }
0x1c3a   :  { %p2567_p9 = pnand %p2566_p8, %p2560_p5 }
0x1ca2   :  { %v1844_v23 = vpop.permute.xlu0 %1843  ;;  %v1842_v27 = vpop.permute.xlu1 %1841 }
0x1ca3   :  { %v1848_v28 = vmul.f32 %v1844_v23, %v1840_v58  ;;  %v1847_v0 = vmul.f32 %v1842_v27, %v1785_v63 }
0x1ca5   :  { %v1849_v29 = vadd.f32 %v1848_v28, %v1847_v0 }
0x1ca6   :  { %v1846_v30 = vpop.permute.xlu1 %1845 }
0x1ca7   :  { %2537 = vtanh.f32 %v1849_v29 }
0x1cb4   :  { %v2538_v18 = vpop.eup %2537 }
0x1cb5   :  { %v1851_v31 = vmul.f32 %v2538_v18, %v1846_v30 }
0x1cb7   :  { %v1852_v1 = vpack.c.bf16 %v1851_v31, %v1851_v31 }
0x1cb9   :  { %2322 = vmatmul.mubr.msk.bf16.vlgmr.msra.gmra.mxu1 %vm83_vm0, %v1852_v1 }
0x1d79   :  { %v1913_v6 = vpop.f32.mrf.mxu1 }
0x1d7a   :  { %v1914_v32 = vadd.f32 %v2025_v19, %v1913_v6 }
0x1d7b   :  { %v2323_v34 = vpop.f32.mrf.mxu1 }
0x1d7c   :  { %1919 = vst [vmem:[#allocation6] sm:$0xff] %v1914_v32 }
0x1d7d   :  { %v1916_v38 = vpop.f32.mrf.mxu1 }
0x1d7e   :  { %2570 = shalt.err (!%p2567_p9)
}
0x1d7f   :  { %1929 = dma.vmem_to_hbm [thread:$0]  %s1927_s21, 128, %s3127_s6, [#allocation5]   ;;  %v2324_v39 = vpop.f32.mrf.mxu1 }
0x1d80   :  { %2581 = dma.done.wait [#allocation5], 128  }
0x1d81   :  { %2582 = vsyncadd [#allocation5], 4294967168 }
0x1d82   :  { %1933 = vsyncpa [#allocation4], 1 }
0x1d83   :  { %1934 = vsyncpa [#allocation5], 1 }

</bundles_post_ra>
